<compile_context>
chip_gen: v6e
topology: v6e:2x2x1
jax: 0.10.0
libtpu: 0.0.40
codegen_flags: <defaults>
</compile_context>

<pallas_src>
import functools

import jax
import jax.numpy as jnp
from jax.experimental import pallas as pl
from jax.experimental.pallas import tpu as pltpu

NUM_CLASSES = 200            # num_classes=200 in the module
NC_PAD = 256                 # class axis padded to a lane multiple (200 -> 256)
M_ATTN = 32                  # WSDAN_CAL M=32 attention maps
C_FEAT = 32                  # stand-in backbone feature dim (real resnet101 -> 2048)
AF_DIM = M_ATTN + C_FEAT     # fused attention|feature projection width
VIT_DIM = 32                 # stand-in ViT hidden size (real ViT-B_16 -> 768)
PATCH = 4                    # stand-in patch size (real ViT-B_16 -> 16, img 448)
HW_TILE_TARGET = 1024        # lane-tile target for the HW reduction axis (sweepable)


def _ceil_to(x, m):
    return ((x + m - 1) // m) * m


# ----------------------------------------------------------------------------
# Pallas kernels
# ----------------------------------------------------------------------------
def _make_cal_bap_kernel(hw_total, c_in):
    """WSDAN-CAL stand-in backbone + bilinear attention pooling, HW-in-lanes.

    grid = (N images [parallel], HW tiles [arbitrary / reduction]).
      x_ref   : (1, C, HW_TILE)    bf16  one image tile, HW lane-major
      waf_ref : (AF_DIM, C)        bf16  fused attention|feature 1x1-conv weights
      fm_ref  : (1, M, Cf)         f32   pooled feature matrix (written at last tile)
      amap_ref: (1, 1, HW_TILE)    f32   lane-dense attention map (mean of M maps)
      acc_ref : (M, Cf)            f32   VMEM accumulator across HW tiles
    """
    inv_hw = 1.0 / float(hw_total)
    inv_m = 1.0 / float(M_ATTN)

    def kernel(x_ref, waf_ref, fm_ref, amap_ref, acc_ref):
        t = pl.program_id(1)

        @pl.when(t == 0)
        def _init():
            acc_ref[...] = jnp.zeros_like(acc_ref)

        x = x_ref[0].astype(jnp.float32)            # [C, HW_T]  (HW in lanes)
        w = waf_ref[...].astype(jnp.float32)        # [AF_DIM, C]

        # K=C (=3) 1x1-conv as broadcast FMAs on the VPU (MXU left free for BAP).
        af = w[:, 0:1] * x[0:1, :]
        for cc in range(1, c_in):
            af = af + w[:, cc:cc + 1] * x[cc:cc + 1, :]
        af = jnp.maximum(af, 0.0)                   # [AF_DIM, HW_T]

        attn = af[:M_ATTN, :]                       # [M,  HW_T]
        feat = af[M_ATTN:, :]                       # [Cf, HW_T]

        # BAP partial sum: acc[m, c] += sum_hw attn[m, hw] * feat[c, hw]
        acc_ref[...] += jax.lax.dot_general(
            attn, feat, (((1,), (1,)), ((), ())),
            preferred_element_type=jnp.float32)

        # Lane-dense attention-map row: sublane (XLU) mean over the M maps.
        amap_ref[0] = jnp.sum(attn, axis=0, keepdims=True) * inv_m   # [1, HW_T]

        # TODO(synk): real WSDAN_CAL applies sign-sqrt + L2 norm to the pooled
        # feature matrix; omitted in this stand-in.
        @pl.when(t == pl.num_programs(1) - 1)
        def _finalize():
            fm_ref[0] = acc_ref[...] * inv_hw

    return kernel


def _vit_kernel(tok_ref, we_ref, wh_ref, bh_ref, ys_ref):
    """ViT stand-in, one image per grid step: patch-embed + ReLU + mean-pool + head."""
    # TODO(synk): full ViT-B_16 (overlap split, slide_step=12, 12 transformer
    # blocks) not reproduced; this is a deterministic stand-in head.
    emb = jnp.maximum(
        jnp.dot(tok_ref[0], we_ref[...], preferred_element_type=jnp.float32),
        0.0)                                                      # [P, D]
    pooled = jnp.mean(emb, axis=0, keepdims=True)                 # [1, D] sublane mean
    ys_ref[0] = jnp.dot(pooled.astype(jnp.bfloat16), wh_ref[...],
                        preferred_element_type=jnp.float32) + bh_ref[...]


def _fc_ensemble_kernel(fm_ref, wfc_ref, bfc_ref, ys_ref, out_ref):
    """Fused classifier FC (linearity-folded over the 8 variants) + ensemble combine.

      fm_ref : (8, BT, M*Cf) f32  pooled features of all 8 WSDAN variants
      wfc_ref: (M*Cf, NC_PAD) bf16
      bfc_ref: (1, NC_PAD)   f32
      ys_ref : (BT, NC_PAD)  f32  ViT logits
      out_ref: (BT, NC_PAD)  f32  softmax(y_pred) + softmax(y_s)
    """
    n_var = fm_ref.shape[0]
    # y_pred = ((raw+c1+c2+c3)/4 + (raw_m+c1m+c2m+c3m)/4)/2 == mean of all 8;
    # fold the averaging into the features (exact for the linear FC + bias).
    fm_sum = fm_ref[0]
    for v in range(1, n_var):
        fm_sum = fm_sum + fm_ref[v]
    fm_mean = fm_sum * (1.0 / n_var)                               # [BT, MC] f32

    y_pred = jnp.dot(fm_mean.astype(jnp.bfloat16), wfc_ref[...],
                     preferred_element_type=jnp.float32) + bfc_ref[...]

    bsz, ncp = out_ref.shape
    valid = jax.lax.broadcasted_iota(jnp.int32, (bsz, ncp), 1) < NUM_CLASSES

    def masked_softmax(z):
        z = jnp.where(valid, z, -1e30)           # ignore padded class lanes
        z = z - jnp.max(z, axis=1, keepdims=True)
        e = jnp.exp(z)
        return e / jnp.sum(e, axis=1, keepdims=True)

    out_ref[...] = masked_softmax(y_pred) + masked_softmax(ys_ref[...])


# ----------------------------------------------------------------------------
# Pallas wrappers
# ----------------------------------------------------------------------------
def cal_bap_forward(x_chw_bf16, waf_t_bf16, hw_tile, hw_real):
    """Batched WSDAN stand-in: x [N, C, HW_pad] -> (fm [N, M, Cf], amap [N, 1, HW_pad])."""
    n, c, hw_pad = x_chw_bf16.shape
    n_t = hw_pad // hw_tile
    kernel = _make_cal_bap_kernel(hw_real, c)
    # Explicit VMEM budget (review): blocks here are tiny (C=3 lane-major tile +
    # lane-dense amap tile); 32 MiB scoped limit is safe on v5e/v6e/v7x alike.
    return pl.pallas_call(
        kernel,
        out_shape=(jax.ShapeDtypeStruct((n, M_ATTN, C_FEAT), jnp.float32),
                   jax.ShapeDtypeStruct((n, 1, hw_pad), jnp.float32)),
        grid_spec=pltpu.PrefetchScalarGridSpec(
            num_scalar_prefetch=0,
            grid=(n, n_t),
            in_specs=[
                pl.BlockSpec((1, c, hw_tile), lambda b, t: (b, 0, t)),
                pl.BlockSpec((AF_DIM, c), lambda b, t: (0, 0)),
            ],
            out_specs=[
                pl.BlockSpec((1, M_ATTN, C_FEAT), lambda b, t: (b, 0, 0)),
                pl.BlockSpec((1, 1, hw_tile), lambda b, t: (b, 0, t)),
            ],
            scratch_shapes=[pltpu.VMEM((M_ATTN, C_FEAT), jnp.float32)]),
        compiler_params=pltpu.CompilerParams(
            dimension_semantics=("parallel", "arbitrary"),
            vmem_limit_bytes=32 * 1024 * 1024),
    )(x_chw_bf16, waf_t_bf16)


def vit_forward(x_s_nhwc, vit_params):
    """Synthetic sim_trans (VisionTransformer stand-in), per-image parallel grid."""
    we, wh, bh = vit_params
    b, h, w, c = x_s_nhwc.shape
    p = PATCH
    npatch = (h // p) * (w // p)
    dpatch = p * p * c
    t = x_s_nhwc.reshape(b, h // p, p, w // p, p, c)
    tok = jnp.transpose(t, (0, 1, 3, 2, 4, 5)).reshape(b, npatch, dpatch)
    tok = tok.astype(jnp.bfloat16)

    ys = pl.pallas_call(
        _vit_kernel,
        out_shape=jax.ShapeDtypeStruct((b, 1, NC_PAD), jnp.float32),
        grid_spec=pltpu.PrefetchScalarGridSpec(
            num_scalar_prefetch=0,
            grid=(b,),
            in_specs=[
                pl.BlockSpec((1, npatch, dpatch), lambda i: (i, 0, 0)),
                pl.BlockSpec((dpatch, VIT_DIM), lambda i: (0, 0)),
                pl.BlockSpec((VIT_DIM, NC_PAD), lambda i: (0, 0)),
                pl.BlockSpec((1, NC_PAD), lambda i: (0, 0)),
            ],
            out_specs=pl.BlockSpec((1, 1, NC_PAD), lambda i: (i, 0, 0))),
        compiler_params=pltpu.CompilerParams(
            dimension_semantics=("parallel",)),
    )(tok, we, wh, bh)
    return ys[:, 0, :]                                             # [B, NC_PAD]


def fc_ensemble(fm_stack, wfc_bf16, bfc, y_s):
    """One launch: averaged-FC over the 8 variants + softmaxes + sum."""
    n_var, b, mc = fm_stack.shape
    # Batch tiling: 8-row tiles when possible (parallel axis feeds v7x's 2 TCs
    # and keeps sublane blocks 8-aligned); otherwise the whole batch in one block.
    bt = 8 if (b % 8 == 0) else b
    grid = (b // bt,)
    return pl.pallas_call(
        _fc_ensemble_kernel,
        out_shape=jax.ShapeDtypeStruct((b, NC_PAD), jnp.float32),
        grid_spec=pltpu.PrefetchScalarGridSpec(
            num_scalar_prefetch=0,
            grid=grid,
            in_specs=[
                pl.BlockSpec((n_var, bt, mc), lambda i: (0, i, 0)),
                pl.BlockSpec((mc, NC_PAD), lambda i: (0, 0)),
                pl.BlockSpec((1, NC_PAD), lambda i: (0, 0)),
                pl.BlockSpec((bt, NC_PAD), lambda i: (i, 0)),
            ],
            out_specs=pl.BlockSpec((bt, NC_PAD), lambda i: (i, 0))),
        compiler_params=pltpu.CompilerParams(
            dimension_semantics=("parallel",)),
    )(fm_stack, wfc_bf16, bfc, y_s)


# ----------------------------------------------------------------------------
# WSDAN batch_augment(mode='crop') -- plain-JAX glue
# ----------------------------------------------------------------------------
def _crop_resize_one(img, amap, theta, padding_ratio):
    """Threshold attention, bbox with padding, crop, bilinear resize back
    (align_corners=True, like F.upsample_bilinear).  NHWC single image."""
    # TODO(synk): data-dependent crop + dynamic-shape bilinear resize has no clean
    # Pallas equivalent (gather with runtime box); kept in plain JAX glue.
    h, w, _ = img.shape
    theta_c = theta * jnp.max(amap)
    mask = amap >= theta_c
    rows = jnp.any(mask, axis=1)
    cols = jnp.any(mask, axis=0)
    ridx = jnp.arange(h)
    cidx = jnp.arange(w)
    rmin = jnp.min(jnp.where(rows, ridx, h)).astype(jnp.float32)
    rmax = jnp.max(jnp.where(rows, ridx, -1)).astype(jnp.float32)
    cmin = jnp.min(jnp.where(cols, cidx, w)).astype(jnp.float32)
    cmax = jnp.max(jnp.where(cols, cidx, -1)).astype(jnp.float32)
    hmin = jnp.maximum(jnp.floor(rmin - padding_ratio * h), 0.0)
    hmax = jnp.minimum(jnp.floor(rmax + padding_ratio * h), float(h))
    wmin = jnp.maximum(jnp.floor(cmin - padding_ratio * w), 0.0)
    wmax = jnp.minimum(jnp.floor(cmax + padding_ratio * w), float(w))
    hmax = jnp.maximum(hmax, hmin + 1.0)        # guard degenerate box
    wmax = jnp.maximum(wmax, wmin + 1.0)
    ys = hmin + (hmax - 1.0 - hmin) * jnp.arange(h) / float(h - 1)
    xs = wmin + (wmax - 1.0 - wmin) * jnp.arange(w) / float(w - 1)
    y0 = jnp.clip(jnp.floor(ys).astype(jnp.int32), 0, h - 1)
    x0 = jnp.clip(jnp.floor(xs).astype(jnp.int32), 0, w - 1)
    y1 = jnp.minimum(y0 + 1, h - 1)
    x1 = jnp.minimum(x0 + 1, w - 1)
    wy = (ys - y0.astype(jnp.float32))[:, None, None]
    wx = (xs - x0.astype(jnp.float32))[None, :, None]
    rows0 = img[y0]                              # gather source rows once
    rows1 = img[y1]
    g00 = rows0[:, x0, :]
    g01 = rows0[:, x1, :]
    g10 = rows1[:, x0, :]
    g11 = rows1[:, x1, :]
    top = g00 * (1.0 - wx) + g01 * wx
    bot = g10 * (1.0 - wx) + g11 * wx
    return top * (1.0 - wy) + bot * wy


def _pad_hw(x_chw, hw_pad):
    hw = x_chw.shape[-1]
    if hw_pad == hw:
        return x_chw
    return jnp.pad(x_chw, ((0, 0), (0, 0), (0, hw_pad - hw)))


# ----------------------------------------------------------------------------
# Ensemble forward (mirror of EnsembleModel.forward(x_c, x_s))
# ----------------------------------------------------------------------------
def ensemble_forward(params, x_c, x_s):
    waf_t, wfc, bfc = params["cal"]
    vit_p = params["vit"]

    b, c, h, w = x_c.shape
    hw = h * w
    # HW-in-lanes tiling: tile is a multiple of 128 (capped at HW_TILE_TARGET to
    # bound live vregs for the (AF_DIM, hw_tile) activation); HW zero-padded up
    # to a tile multiple (zero pixels contribute nothing to the BAP sums).
    hw_tile = min(HW_TILE_TARGET, _ceil_to(hw, 128))
    hw_pad = _ceil_to(hw, hw_tile)

    # NHWC copies only for the crop glue; CAL kernels consume C-major directly.
    xc_nhwc = jnp.transpose(x_c, (0, 2, 3, 1))                     # [B, H, W, C]
    xm_nhwc = jnp.flip(xc_nhwc, axis=2)                            # torch.flip(x_c, dims=[3])
    xs_nhwc = jnp.transpose(x_s, (0, 2, 3, 1))

    # y_s = self.sim_trans(x_s)
    y_s = vit_forward(xs_nhwc, vit_p)                              # [B, NC_PAD]

    # raw + mirrored WSDAN pass batched into one call of 2B images (HW in lanes)
    xc_chw = x_c.reshape(b, c, hw)
    xm_chw = jnp.flip(x_c, axis=3).reshape(b, c, hw)
    x_raw = _pad_hw(jnp.concatenate([xc_chw, xm_chw], axis=0), hw_pad)
    fm_raw, amap_raw = cal_bap_forward(x_raw.astype(jnp.bfloat16), waf_t, hw_tile, hw)
    amap_c = amap_raw[:b, 0, :hw].reshape(b, h, w)
    amap_m = amap_raw[b:, 0, :hw].reshape(b, h, w)
    # TODO(synk): WSDAN_CAL auxiliary (counterfactual) head not modelled; its
    # outputs are unused by the ensemble forward.

    # six attention crops (3 thetas x {orig, mirrored}) via nested vmap
    thetas = jnp.array([0.3, 0.2, 0.1], jnp.float32)
    pads = jnp.array([0.1, 0.1, 0.05], jnp.float32)
    crop_batch = jax.vmap(_crop_resize_one, in_axes=(0, 0, None, None))
    crop_cfgs = jax.vmap(crop_batch, in_axes=(None, None, 0, 0))
    crops_c = crop_cfgs(xc_nhwc, amap_c, thetas, pads)             # [3, B, H, W, C]
    crops_m = crop_cfgs(xm_nhwc, amap_m, thetas, pads)             # [3, B, H, W, C]
    crops = jnp.concatenate([crops_c, crops_m], axis=0)            # [6, B, H, W, C]
    crops = jnp.transpose(crops, (0, 1, 4, 2, 3)).reshape(6 * b, c, hw)
    crops = _pad_hw(crops, hw_pad)

    # all six crop variants in one batched CAL call
    fm_crop, _ = cal_bap_forward(crops.astype(jnp.bfloat16), waf_t, hw_tile, hw)

    # Stack the 8 pooled feature matrices; the FC kernel averages them (the
    # 8-way logit averaging is linear, so ordering is irrelevant).
    mc = M_ATTN * C_FEAT
    fm_stack = jnp.concatenate(
        [fm_raw.reshape(2, b, mc), fm_crop.reshape(6, b, mc)], axis=0)

    y_ens = fc_ensemble(fm_stack, wfc, bfc, y_s)                   # [B, NC_PAD]
    return y_ens[:, :NUM_CLASSES]


# ----------------------------------------------------------------------------
# Deterministic parameter init (synthetic stand-in weights)
# ----------------------------------------------------------------------------
def init_params(key, c_in=3):
    ks = jax.random.split(key, 4)
    s = 0.1
    dpatch = PATCH * PATCH * c_in
    mc = M_ATTN * C_FEAT

    def pad_classes(wm):
        return jnp.pad(wm, ((0, 0), (0, NC_PAD - NUM_CLASSES)))

    waf_t = s * jax.random.normal(ks[0], (AF_DIM, c_in), jnp.float32)    # fused [wa|wf]^T
    wfc = pad_classes(s * jax.random.normal(ks[1], (mc, NUM_CLASSES), jnp.float32))
    bfc = jnp.zeros((1, NC_PAD), jnp.float32)
    we = s * jax.random.normal(ks[2], (dpatch, VIT_DIM), jnp.float32)
    wh = pad_classes(s * jax.random.normal(ks[3], (VIT_DIM, NUM_CLASSES), jnp.float32))
    bh = jnp.zeros((1, NC_PAD), jnp.float32)

    return {
        "cal": (waf_t.astype(jnp.bfloat16), wfc.astype(jnp.bfloat16), bfc),
        "vit": (we.astype(jnp.bfloat16), wh.astype(jnp.bfloat16), bh),
    }


if __name__ == "__main__":
    key = jax.random.PRNGKey(0)
    kp, kc, ks = jax.random.split(key, 3)
    params = init_params(kp)

    B, C, H, W = 2, 3, 16, 16            # small stand-in for 448x448 RGB inputs
    x_c = jax.random.normal(kc, (B, C, H, W), jnp.float32)
    x_s = jax.random.normal(ks, (B, C, H, W), jnp.float32)

    fwd = jax.jit(functools.partial(ensemble_forward, params))
    y_ensemble = fwd(x_c, x_s)
    jax.block_until_ready(y_ensemble)

    assert y_ensemble.shape == (B, NUM_CLASSES)
    assert bool(jnp.all(jnp.isfinite(y_ensemble)))
    # each softmax sums to 1 over the 200 real classes, so every row sums to ~2
    assert bool(jnp.allclose(jnp.sum(y_ensemble, axis=1), 2.0, atol=1e-3))
    print("KERNEL_OK")
</pallas_src>

<mosaic_0001>
module attributes {stable_mosaic.version = 11 : i64} {
  func.func @kernel(%arg0: i32, %arg1: i32, %arg2: memref<1x3x256xbf16, #tpu.memory_space<vmem>>, %arg3: memref<64x3xbf16, #tpu.memory_space<vmem>>, %arg4: memref<1x32x32xf32, #tpu.memory_space<vmem>>, %arg5: memref<1x1x256xf32, #tpu.memory_space<vmem>>, %arg6: memref<32x32xf32, #tpu.memory_space<vmem>>) attributes {dimension_semantics = [#tpu.dimension_semantics<parallel>, #tpu.dimension_semantics<arbitrary>], iteration_bounds = array<i64: 4, 1>, scalar_prefetch = 0 : i64, scratch_operands = 1 : i64, tpu.core_type = #tpu.core_type<tc>, window_params = [{transform_indices = @transform_0, window_bounds = array<i64: 1, 3, 256>}, {pipeline_mode = #tpu.pipeline_mode<synchronous>, transform_indices = @transform_1, window_bounds = array<i64: 64, 3>}, {transform_indices = @transform_2, window_bounds = array<i64: 1, 32, 32>}, {transform_indices = @transform_3, window_bounds = array<i64: 1, 1, 256>}]} {
    %c0_i32 = arith.constant 0 : i32
    %0 = arith.cmpi eq, %arg1, %c0_i32 : i32
    %1 = arith.extui %0 : i1 to i32
    %c0_i32_0 = arith.constant 0 : i32
    %2 = arith.cmpi ne, %1, %c0_i32_0 : i32
    scf.if %2 {
      %cst_17 = arith.constant 0.000000e+00 : f32
      %43 = vector.broadcast %cst_17 : f32 to vector<32x32xf32>
      %c0_18 = arith.constant 0 : index
      %c0_19 = arith.constant 0 : index
      %44 = vector.load %arg6[%c0_18, %c0_19] : memref<32x32xf32, #tpu.memory_space<vmem>>, vector<32x32xf32>
      tpu.vector_store %arg6[%c0_18, %c0_19], %43 {strides = array<i32>} : memref<32x32xf32, #tpu.memory_space<vmem>>, vector<32x32xf32>,
    } else {
    }
    %c0 = arith.constant 0 : index
    %c0_1 = arith.constant 0 : index
    %c0_2 = arith.constant 0 : index
    %3 = vector.load %arg2[%c0, %c0_1, %c0_2] : memref<1x3x256xbf16, #tpu.memory_space<vmem>>, vector<1x3x256xbf16>
    %4 = vector.shape_cast %3 : vector<1x3x256xbf16> to vector<3x256xbf16>
    %5 = arith.extf %4 : vector<3x256xbf16> to vector<3x256xf32>
    %c0_3 = arith.constant 0 : index
    %c0_4 = arith.constant 0 : index
    %6 = vector.load %arg3[%c0_3, %c0_4] : memref<64x3xbf16, #tpu.memory_space<vmem>>, vector<64x3xbf16>
    %7 = arith.extf %6 : vector<64x3xbf16> to vector<64x3xf32>
    %8 = vector.extract_strided_slice %7 {offsets = [0, 0], sizes = [64, 1], strides = [1, 1]} : vector<64x3xf32> to vector<64x1xf32>
    %9 = vector.extract_strided_slice %5 {offsets = [0, 0], sizes = [1, 256], strides = [1, 1]} : vector<3x256xf32> to vector<1x256xf32>
    %10 = vector.broadcast %8 : vector<64x1xf32> to vector<64x256xf32>
    %11 = vector.broadcast %9 : vector<1x256xf32> to vector<64x256xf32>
    %12 = arith.mulf %10, %11 : vector<64x256xf32>
    %13 = vector.extract_strided_slice %7 {offsets = [0, 1], sizes = [64, 1], strides = [1, 1]} : vector<64x3xf32> to vector<64x1xf32>
    %14 = vector.extract_strided_slice %5 {offsets = [1, 0], sizes = [1, 256], strides = [1, 1]} : vector<3x256xf32> to vector<1x256xf32>
    %15 = vector.broadcast %13 : vector<64x1xf32> to vector<64x256xf32>
    %16 = vector.broadcast %14 : vector<1x256xf32> to vector<64x256xf32>
    %17 = arith.mulf %15, %16 : vector<64x256xf32>
    %18 = arith.addf %12, %17 : vector<64x256xf32>
    %19 = vector.extract_strided_slice %7 {offsets = [0, 2], sizes = [64, 1], strides = [1, 1]} : vector<64x3xf32> to vector<64x1xf32>
    %20 = vector.extract_strided_slice %5 {offsets = [2, 0], sizes = [1, 256], strides = [1, 1]} : vector<3x256xf32> to vector<1x256xf32>
    %21 = vector.broadcast %19 : vector<64x1xf32> to vector<64x256xf32>
    %22 = vector.broadcast %20 : vector<1x256xf32> to vector<64x256xf32>
    %23 = arith.mulf %21, %22 : vector<64x256xf32>
    %24 = arith.addf %18, %23 : vector<64x256xf32>
    %cst = arith.constant 0.000000e+00 : f32
    %25 = vector.broadcast %cst : f32 to vector<64x256xf32>
    %26 = arith.maximumf %24, %25 : vector<64x256xf32>
    %27 = vector.extract_strided_slice %26 {offsets = [0, 0], sizes = [32, 256], strides = [1, 1]} : vector<64x256xf32> to vector<32x256xf32>
    %28 = vector.extract_strided_slice %26 {offsets = [32, 0], sizes = [32, 256], strides = [1, 1]} : vector<64x256xf32> to vector<32x256xf32>
    %c0_5 = arith.constant 0 : index
    %c0_6 = arith.constant 0 : index
    %29 = vector.load %arg6[%c0_5, %c0_6] : memref<32x32xf32, #tpu.memory_space<vmem>>, vector<32x32xf32>
    %cst_7 = arith.constant dense<0.000000e+00> : vector<32x32xf32>
    %30 = tpu.matmul %27, %28, %cst_7 {dimension_numbers = #tpu.dot_dimension_numbers<[1], [1], [0], [0], [0, 0, 1, 0], [], []>} : vector<32x256xf32>, vector<32x256xf32>, vector<32x32xf32> -> vector<32x32xf32>
    %31 = arith.addf %29, %30 : vector<32x32xf32>
    %c0_8 = arith.constant 0 : index
    %c0_9 = arith.constant 0 : index
    %32 = vector.load %arg6[%c0_8, %c0_9] : memref<32x32xf32, #tpu.memory_space<vmem>>, vector<32x32xf32>
    tpu.vector_store %arg6[%c0_8, %c0_9], %31 {strides = array<i32>} : memref<32x32xf32, #tpu.memory_space<vmem>>, vector<32x32xf32>,
    %cst_10 = arith.constant dense<0.000000e+00> : vector<256xf32>
    %33 = vector.multi_reduction <add>, %27, %cst_10 [0] : vector<32x256xf32> to vector<256xf32>
    %34 = vector.shape_cast %33 : vector<256xf32> to vector<1x256xf32>
    %cst_11 = arith.constant 3.125000e-02 : f32
    %35 = vector.broadcast %cst_11 : f32 to vector<1x256xf32>
    %36 = arith.mulf %34, %35 : vector<1x256xf32>
    %c0_12 = arith.constant 0 : index
    %c0_13 = arith.constant 0 : index
    %c0_14 = arith.constant 0 : index
    %37 = vector.load %arg5[%c0_12, %c0_13, %c0_14] : memref<1x1x256xf32, #tpu.memory_space<vmem>>, vector<1x1x256xf32>
    %38 = vector.shape_cast %37 : vector<1x1x256xf32> to vector<1x256xf32>
    %39 = vector.shape_cast %36 : vector<1x256xf32> to vector<1x1x256xf32>
    tpu.vector_store %arg5[%c0_12, %c0_13, %c0_14], %39 {strides = array<i32>} : memref<1x1x256xf32, #tpu.memory_space<vmem>>, vector<1x1x256xf32>,
    %c0_i32_15 = arith.constant 0 : i32
    %40 = arith.cmpi eq, %arg1, %c0_i32_15 : i32
    %41 = arith.extui %40 : i1 to i32
    %c0_i32_16 = arith.constant 0 : i32
    %42 = arith.cmpi ne, %41, %c0_i32_16 : i32
    scf.if %42 {
      %c0_17 = arith.constant 0 : index
      %c0_18 = arith.constant 0 : index
      %43 = vector.load %arg6[%c0_17, %c0_18] : memref<32x32xf32, #tpu.memory_space<vmem>>, vector<32x32xf32>
      %cst_19 = arith.constant 3.906250e-03 : f32
      %44 = vector.broadcast %cst_19 : f32 to vector<32x32xf32>
      %45 = arith.mulf %43, %44 : vector<32x32xf32>
      %c0_20 = arith.constant 0 : index
      %c0_21 = arith.constant 0 : index
      %c0_22 = arith.constant 0 : index
      %46 = vector.load %arg4[%c0_20, %c0_21, %c0_22] : memref<1x32x32xf32, #tpu.memory_space<vmem>>, vector<1x32x32xf32>
      %47 = vector.shape_cast %46 : vector<1x32x32xf32> to vector<32x32xf32>
      %48 = vector.shape_cast %45 : vector<32x32xf32> to vector<1x32x32xf32>
      tpu.vector_store %arg4[%c0_20, %c0_21, %c0_22], %48 {strides = array<i32>} : memref<1x32x32xf32, #tpu.memory_space<vmem>>, vector<1x32x32xf32>,
    } else {
    }
    return
  }
  func.func @transform_0(%arg0: i32, %arg1: i32) -> (i32, i32, i32) {
    %c0_i32 = arith.constant 0 : i32
    %c0_i32_0 = arith.constant 0 : i32
    return %arg0, %c0_i32, %arg1 : i32, i32, i32
  }
  func.func @transform_1(%arg0: i32, %arg1: i32) -> (i32, i32) {
    %c0_i32 = arith.constant 0 : i32
    %c0_i32_0 = arith.constant 0 : i32
    %c0_i32_1 = arith.constant 0 : i32
    return %c0_i32, %c0_i32_0 : i32, i32
  }
  func.func @transform_2(%arg0: i32, %arg1: i32) -> (i32, i32, i32) {
    %c0_i32 = arith.constant 0 : i32
    %c0_i32_0 = arith.constant 0 : i32
    %c0_i32_1 = arith.constant 0 : i32
    return %arg0, %c0_i32, %c0_i32_0 : i32, i32, i32
  }
  func.func @transform_3(%arg0: i32, %arg1: i32) -> (i32, i32, i32) {
    %c0_i32 = arith.constant 0 : i32
    %c0_i32_0 = arith.constant 0 : i32
    return %arg0, %c0_i32, %arg1 : i32, i32, i32
  }
}

module attributes {stable_mosaic.version = 11 : i64} {
  func.func @kernel(%arg0: i32, %arg1: i32, %arg2: memref<1x3x256xbf16, #tpu.memory_space<vmem>>, %arg3: memref<64x3xbf16, #tpu.memory_space<vmem>>, %arg4: memref<1x32x32xf32, #tpu.memory_space<vmem>>, %arg5: memref<1x1x256xf32, #tpu.memory_space<vmem>>, %arg6: memref<32x32xf32, #tpu.memory_space<vmem>>) attributes {dimension_semantics = [#tpu.dimension_semantics<parallel>, #tpu.dimension_semantics<arbitrary>], iteration_bounds = array<i64: 12, 1>, scalar_prefetch = 0 : i64, scratch_operands = 1 : i64, tpu.core_type = #tpu.core_type<tc>, window_params = [{transform_indices = @transform_0, window_bounds = array<i64: 1, 3, 256>}, {pipeline_mode = #tpu.pipeline_mode<synchronous>, transform_indices = @transform_1, window_bounds = array<i64: 64, 3>}, {transform_indices = @transform_2, window_bounds = array<i64: 1, 32, 32>}, {transform_indices = @transform_3, window_bounds = array<i64: 1, 1, 256>}]} {
    %c0_i32 = arith.constant 0 : i32
    %0 = arith.cmpi eq, %arg1, %c0_i32 : i32
    %1 = arith.extui %0 : i1 to i32
    %c0_i32_0 = arith.constant 0 : i32
    %2 = arith.cmpi ne, %1, %c0_i32_0 : i32
    scf.if %2 {
      %cst_17 = arith.constant 0.000000e+00 : f32
      %43 = vector.broadcast %cst_17 : f32 to vector<32x32xf32>
      %c0_18 = arith.constant 0 : index
      %c0_19 = arith.constant 0 : index
      %44 = vector.load %arg6[%c0_18, %c0_19] : memref<32x32xf32, #tpu.memory_space<vmem>>, vector<32x32xf32>
      tpu.vector_store %arg6[%c0_18, %c0_19], %43 {strides = array<i32>} : memref<32x32xf32, #tpu.memory_space<vmem>>, vector<32x32xf32>,
    } else {
    }
    %c0 = arith.constant 0 : index
    %c0_1 = arith.constant 0 : index
    %c0_2 = arith.constant 0 : index
    %3 = vector.load %arg2[%c0, %c0_1, %c0_2] : memref<1x3x256xbf16, #tpu.memory_space<vmem>>, vector<1x3x256xbf16>
    %4 = vector.shape_cast %3 : vector<1x3x256xbf16> to vector<3x256xbf16>
    %5 = arith.extf %4 : vector<3x256xbf16> to vector<3x256xf32>
    %c0_3 = arith.constant 0 : index
    %c0_4 = arith.constant 0 : index
    %6 = vector.load %arg3[%c0_3, %c0_4] : memref<64x3xbf16, #tpu.memory_space<vmem>>, vector<64x3xbf16>
    %7 = arith.extf %6 : vector<64x3xbf16> to vector<64x3xf32>
    %8 = vector.extract_strided_slice %7 {offsets = [0, 0], sizes = [64, 1], strides = [1, 1]} : vector<64x3xf32> to vector<64x1xf32>
    %9 = vector.extract_strided_slice %5 {offsets = [0, 0], sizes = [1, 256], strides = [1, 1]} : vector<3x256xf32> to vector<1x256xf32>
    %10 = vector.broadcast %8 : vector<64x1xf32> to vector<64x256xf32>
    %11 = vector.broadcast %9 : vector<1x256xf32> to vector<64x256xf32>
    %12 = arith.mulf %10, %11 : vector<64x256xf32>
    %13 = vector.extract_strided_slice %7 {offsets = [0, 1], sizes = [64, 1], strides = [1, 1]} : vector<64x3xf32> to vector<64x1xf32>
    %14 = vector.extract_strided_slice %5 {offsets = [1, 0], sizes = [1, 256], strides = [1, 1]} : vector<3x256xf32> to vector<1x256xf32>
    %15 = vector.broadcast %13 : vector<64x1xf32> to vector<64x256xf32>
    %16 = vector.broadcast %14 : vector<1x256xf32> to vector<64x256xf32>
    %17 = arith.mulf %15, %16 : vector<64x256xf32>
    %18 = arith.addf %12, %17 : vector<64x256xf32>
    %19 = vector.extract_strided_slice %7 {offsets = [0, 2], sizes = [64, 1], strides = [1, 1]} : vector<64x3xf32> to vector<64x1xf32>
    %20 = vector.extract_strided_slice %5 {offsets = [2, 0], sizes = [1, 256], strides = [1, 1]} : vector<3x256xf32> to vector<1x256xf32>
    %21 = vector.broadcast %19 : vector<64x1xf32> to vector<64x256xf32>
    %22 = vector.broadcast %20 : vector<1x256xf32> to vector<64x256xf32>
    %23 = arith.mulf %21, %22 : vector<64x256xf32>
    %24 = arith.addf %18, %23 : vector<64x256xf32>
    %cst = arith.constant 0.000000e+00 : f32
    %25 = vector.broadcast %cst : f32 to vector<64x256xf32>
    %26 = arith.maximumf %24, %25 : vector<64x256xf32>
    %27 = vector.extract_strided_slice %26 {offsets = [0, 0], sizes = [32, 256], strides = [1, 1]} : vector<64x256xf32> to vector<32x256xf32>
    %28 = vector.extract_strided_slice %26 {offsets = [32, 0], sizes = [32, 256], strides = [1, 1]} : vector<64x256xf32> to vector<32x256xf32>
    %c0_5 = arith.constant 0 : index
    %c0_6 = arith.constant 0 : index
    %29 = vector.load %arg6[%c0_5, %c0_6] : memref<32x32xf32, #tpu.memory_space<vmem>>, vector<32x32xf32>
    %cst_7 = arith.constant dense<0.000000e+00> : vector<32x32xf32>
    %30 = tpu.matmul %27, %28, %cst_7 {dimension_numbers = #tpu.dot_dimension_numbers<[1], [1], [0], [0], [0, 0, 1, 0], [], []>} : vector<32x256xf32>, vector<32x256xf32>, vector<32x32xf32> -> vector<32x32xf32>
    %31 = arith.addf %29, %30 : vector<32x32xf32>
    %c0_8 = arith.constant 0 : index
    %c0_9 = arith.constant 0 : index
    %32 = vector.load %arg6[%c0_8, %c0_9] : memref<32x32xf32, #tpu.memory_space<vmem>>, vector<32x32xf32>
    tpu.vector_store %arg6[%c0_8, %c0_9], %31 {strides = array<i32>} : memref<32x32xf32, #tpu.memory_space<vmem>>, vector<32x32xf32>,
    %cst_10 = arith.constant dense<0.000000e+00> : vector<256xf32>
    %33 = vector.multi_reduction <add>, %27, %cst_10 [0] : vector<32x256xf32> to vector<256xf32>
    %34 = vector.shape_cast %33 : vector<256xf32> to vector<1x256xf32>
    %cst_11 = arith.constant 3.125000e-02 : f32
    %35 = vector.broadcast %cst_11 : f32 to vector<1x256xf32>
    %36 = arith.mulf %34, %35 : vector<1x256xf32>
    %c0_12 = arith.constant 0 : index
    %c0_13 = arith.constant 0 : index
    %c0_14 = arith.constant 0 : index
    %37 = vector.load %arg5[%c0_12, %c0_13, %c0_14] : memref<1x1x256xf32, #tpu.memory_space<vmem>>, vector<1x1x256xf32>
    %38 = vector.shape_cast %37 : vector<1x1x256xf32> to vector<1x256xf32>
    %39 = vector.shape_cast %36 : vector<1x256xf32> to vector<1x1x256xf32>
    tpu.vector_store %arg5[%c0_12, %c0_13, %c0_14], %39 {strides = array<i32>} : memref<1x1x256xf32, #tpu.memory_space<vmem>>, vector<1x1x256xf32>,
    %c0_i32_15 = arith.constant 0 : i32
    %40 = arith.cmpi eq, %arg1, %c0_i32_15 : i32
    %41 = arith.extui %40 : i1 to i32
    %c0_i32_16 = arith.constant 0 : i32
    %42 = arith.cmpi ne, %41, %c0_i32_16 : i32
    scf.if %42 {
      %c0_17 = arith.constant 0 : index
      %c0_18 = arith.constant 0 : index
      %43 = vector.load %arg6[%c0_17, %c0_18] : memref<32x32xf32, #tpu.memory_space<vmem>>, vector<32x32xf32>
      %cst_19 = arith.constant 3.906250e-03 : f32
      %44 = vector.broadcast %cst_19 : f32 to vector<32x32xf32>
      %45 = arith.mulf %43, %44 : vector<32x32xf32>
      %c0_20 = arith.constant 0 : index
      %c0_21 = arith.constant 0 : index
      %c0_22 = arith.constant 0 : index
      %46 = vector.load %arg4[%c0_20, %c0_21, %c0_22] : memref<1x32x32xf32, #tpu.memory_space<vmem>>, vector<1x32x32xf32>
      %47 = vector.shape_cast %46 : vector<1x32x32xf32> to vector<32x32xf32>
      %48 = vector.shape_cast %45 : vector<32x32xf32> to vector<1x32x32xf32>
      tpu.vector_store %arg4[%c0_20, %c0_21, %c0_22], %48 {strides = array<i32>} : memref<1x32x32xf32, #tpu.memory_space<vmem>>, vector<1x32x32xf32>,
    } else {
    }
    return
  }
  func.func @transform_0(%arg0: i32, %arg1: i32) -> (i32, i32, i32) {
    %c0_i32 = arith.constant 0 : i32
    %c0_i32_0 = arith.constant 0 : i32
    return %arg0, %c0_i32, %arg1 : i32, i32, i32
  }
  func.func @transform_1(%arg0: i32, %arg1: i32) -> (i32, i32) {
    %c0_i32 = arith.constant 0 : i32
    %c0_i32_0 = arith.constant 0 : i32
    %c0_i32_1 = arith.constant 0 : i32
    return %c0_i32, %c0_i32_0 : i32, i32
  }
  func.func @transform_2(%arg0: i32, %arg1: i32) -> (i32, i32, i32) {
    %c0_i32 = arith.constant 0 : i32
    %c0_i32_0 = arith.constant 0 : i32
    %c0_i32_1 = arith.constant 0 : i32
    return %arg0, %c0_i32, %c0_i32_0 : i32, i32, i32
  }
  func.func @transform_3(%arg0: i32, %arg1: i32) -> (i32, i32, i32) {
    %c0_i32 = arith.constant 0 : i32
    %c0_i32_0 = arith.constant 0 : i32
    return %arg0, %c0_i32, %arg1 : i32, i32, i32
  }
}

module attributes {stable_mosaic.version = 11 : i64} {
  func.func @_vit_kernel(%arg0: i32, %arg1: memref<1x16x48xbf16, #tpu.memory_space<vmem>>, %arg2: memref<48x32xbf16, #tpu.memory_space<vmem>>, %arg3: memref<32x256xbf16, #tpu.memory_space<vmem>>, %arg4: memref<1x256xf32, #tpu.memory_space<vmem>>, %arg5: memref<1x1x256xf32, #tpu.memory_space<vmem>>) attributes {dimension_semantics = [#tpu.dimension_semantics<parallel>], iteration_bounds = array<i64: 2>, scalar_prefetch = 0 : i64, scratch_operands = 0 : i64, tpu.core_type = #tpu.core_type<tc>, window_params = [{transform_indices = @transform_0, window_bounds = array<i64: 1, 16, 48>}, {pipeline_mode = #tpu.pipeline_mode<synchronous>, transform_indices = @transform_1, window_bounds = array<i64: 48, 32>}, {pipeline_mode = #tpu.pipeline_mode<synchronous>, transform_indices = @transform_2, window_bounds = array<i64: 32, 256>}, {pipeline_mode = #tpu.pipeline_mode<synchronous>, transform_indices = @transform_3, window_bounds = array<i64: 1, 256>}, {transform_indices = @transform_4, window_bounds = array<i64: 1, 1, 256>}]} {
    %c0 = arith.constant 0 : index
    %c0_0 = arith.constant 0 : index
    %c0_1 = arith.constant 0 : index
    %0 = vector.load %arg1[%c0, %c0_0, %c0_1] : memref<1x16x48xbf16, #tpu.memory_space<vmem>>, vector<1x16x48xbf16>
    %1 = vector.shape_cast %0 : vector<1x16x48xbf16> to vector<16x48xbf16>
    %c0_2 = arith.constant 0 : index
    %c0_3 = arith.constant 0 : index
    %2 = vector.load %arg2[%c0_2, %c0_3] : memref<48x32xbf16, #tpu.memory_space<vmem>>, vector<48x32xbf16>
    %cst = arith.constant dense<0.000000e+00> : vector<16x32xf32>
    %3 = tpu.matmul %1, %2, %cst {dimension_numbers = #tpu.dot_dimension_numbers<[1], [0], [0], [1], [0, 0, 1, 1], [], []>} : vector<16x48xbf16>, vector<48x32xbf16>, vector<16x32xf32> -> vector<16x32xf32>
    %cst_4 = arith.constant 0.000000e+00 : f32
    %4 = vector.broadcast %cst_4 : f32 to vector<16x32xf32>
    %5 = arith.maximumf %3, %4 : vector<16x32xf32>
    %cst_5 = arith.constant dense<0.000000e+00> : vector<32xf32>
    %6 = vector.multi_reduction <add>, %5, %cst_5 [0] : vector<16x32xf32> to vector<32xf32>
    %7 = vector.shape_cast %6 : vector<32xf32> to vector<1x32xf32>
    %cst_6 = arith.constant 1.600000e+01 : f32
    %8 = vector.broadcast %cst_6 : f32 to vector<1x32xf32>
    %9 = arith.divf %7, %8 : vector<1x32xf32>
    %10 = arith.truncf %9 : vector<1x32xf32> to vector<1x32xbf16>
    %c0_7 = arith.constant 0 : index
    %c0_8 = arith.constant 0 : index
    %11 = vector.load %arg3[%c0_7, %c0_8] : memref<32x256xbf16, #tpu.memory_space<vmem>>, vector<32x256xbf16>
    %cst_9 = arith.constant dense<0.000000e+00> : vector<1x256xf32>
    %12 = tpu.matmul %10, %11, %cst_9 {dimension_numbers = #tpu.dot_dimension_numbers<[1], [0], [0], [1], [0, 0, 1, 1], [], []>} : vector<1x32xbf16>, vector<32x256xbf16>, vector<1x256xf32> -> vector<1x256xf32>
    %c0_10 = arith.constant 0 : index
    %c0_11 = arith.constant 0 : index
    %13 = vector.load %arg4[%c0_10, %c0_11] : memref<1x256xf32, #tpu.memory_space<vmem>>, vector<1x256xf32>
    %14 = arith.addf %12, %13 : vector<1x256xf32>
    %c0_12 = arith.constant 0 : index
    %c0_13 = arith.constant 0 : index
    %c0_14 = arith.constant 0 : index
    %15 = vector.load %arg5[%c0_12, %c0_13, %c0_14] : memref<1x1x256xf32, #tpu.memory_space<vmem>>, vector<1x1x256xf32>
    %16 = vector.shape_cast %15 : vector<1x1x256xf32> to vector<1x256xf32>
    %17 = vector.shape_cast %14 : vector<1x256xf32> to vector<1x1x256xf32>
    tpu.vector_store %arg5[%c0_12, %c0_13, %c0_14], %17 {strides = array<i32>} : memref<1x1x256xf32, #tpu.memory_space<vmem>>, vector<1x1x256xf32>,
    return
  }
  func.func @transform_0(%arg0: i32) -> (i32, i32, i32) {
    %c0_i32 = arith.constant 0 : i32
    %c0_i32_0 = arith.constant 0 : i32
    %c0_i32_1 = arith.constant 0 : i32
    return %arg0, %c0_i32, %c0_i32_0 : i32, i32, i32
  }
  func.func @transform_1(%arg0: i32) -> (i32, i32) {
    %c0_i32 = arith.constant 0 : i32
    %c0_i32_0 = arith.constant 0 : i32
    %c0_i32_1 = arith.constant 0 : i32
    return %c0_i32, %c0_i32_0 : i32, i32
  }
  func.func @transform_2(%arg0: i32) -> (i32, i32) {
    %c0_i32 = arith.constant 0 : i32
    %c0_i32_0 = arith.constant 0 : i32
    %c0_i32_1 = arith.constant 0 : i32
    return %c0_i32, %c0_i32_0 : i32, i32
  }
  func.func @transform_3(%arg0: i32) -> (i32, i32) {
    %c0_i32 = arith.constant 0 : i32
    %c0_i32_0 = arith.constant 0 : i32
    %c0_i32_1 = arith.constant 0 : i32
    return %c0_i32, %c0_i32_0 : i32, i32
  }
  func.func @transform_4(%arg0: i32) -> (i32, i32, i32) {
    %c0_i32 = arith.constant 0 : i32
    %c0_i32_0 = arith.constant 0 : i32
    %c0_i32_1 = arith.constant 0 : i32
    return %arg0, %c0_i32, %c0_i32_0 : i32, i32, i32
  }
}

module attributes {stable_mosaic.version = 11 : i64} {
  func.func @_fc_ensemble_kernel(%arg0: i32, %arg1: memref<8x2x1024xf32, #tpu.memory_space<vmem>>, %arg2: memref<1024x256xbf16, #tpu.memory_space<vmem>>, %arg3: memref<1x256xf32, #tpu.memory_space<vmem>>, %arg4: memref<2x256xf32, #tpu.memory_space<vmem>>, %arg5: memref<2x256xf32, #tpu.memory_space<vmem>>) attributes {dimension_semantics = [#tpu.dimension_semantics<parallel>], iteration_bounds = array<i64: 1>, scalar_prefetch = 0 : i64, scratch_operands = 0 : i64, tpu.core_type = #tpu.core_type<tc>, window_params = [{transform_indices = @transform_0, window_bounds = array<i64: 8, 2, 1024>}, {pipeline_mode = #tpu.pipeline_mode<synchronous>, transform_indices = @transform_1, window_bounds = array<i64: 1024, 256>}, {pipeline_mode = #tpu.pipeline_mode<synchronous>, transform_indices = @transform_2, window_bounds = array<i64: 1, 256>}, {transform_indices = @transform_3, window_bounds = array<i64: 2, 256>}, {transform_indices = @transform_4, window_bounds = array<i64: 2, 256>}]} {
    %c0 = arith.constant 0 : index
    %c0_0 = arith.constant 0 : index
    %c0_1 = arith.constant 0 : index
    %0 = vector.load %arg1[%c0, %c0_0, %c0_1] : memref<8x2x1024xf32, #tpu.memory_space<vmem>>, vector<1x2x1024xf32>
    %1 = vector.shape_cast %0 : vector<1x2x1024xf32> to vector<2x1024xf32>
    %c1 = arith.constant 1 : index
    %c0_2 = arith.constant 0 : index
    %c0_3 = arith.constant 0 : index
    %2 = vector.load %arg1[%c1, %c0_2, %c0_3] : memref<8x2x1024xf32, #tpu.memory_space<vmem>>, vector<1x2x1024xf32>
    %3 = vector.shape_cast %2 : vector<1x2x1024xf32> to vector<2x1024xf32>
    %4 = arith.addf %1, %3 : vector<2x1024xf32>
    %c2 = arith.constant 2 : index
    %c0_4 = arith.constant 0 : index
    %c0_5 = arith.constant 0 : index
    %5 = vector.load %arg1[%c2, %c0_4, %c0_5] : memref<8x2x1024xf32, #tpu.memory_space<vmem>>, vector<1x2x1024xf32>
    %6 = vector.shape_cast %5 : vector<1x2x1024xf32> to vector<2x1024xf32>
    %7 = arith.addf %4, %6 : vector<2x1024xf32>
    %c3 = arith.constant 3 : index
    %c0_6 = arith.constant 0 : index
    %c0_7 = arith.constant 0 : index
    %8 = vector.load %arg1[%c3, %c0_6, %c0_7] : memref<8x2x1024xf32, #tpu.memory_space<vmem>>, vector<1x2x1024xf32>
    %9 = vector.shape_cast %8 : vector<1x2x1024xf32> to vector<2x1024xf32>
    %10 = arith.addf %7, %9 : vector<2x1024xf32>
    %c4 = arith.constant 4 : index
    %c0_8 = arith.constant 0 : index
    %c0_9 = arith.constant 0 : index
    %11 = vector.load %arg1[%c4, %c0_8, %c0_9] : memref<8x2x1024xf32, #tpu.memory_space<vmem>>, vector<1x2x1024xf32>
    %12 = vector.shape_cast %11 : vector<1x2x1024xf32> to vector<2x1024xf32>
    %13 = arith.addf %10, %12 : vector<2x1024xf32>
    %c5 = arith.constant 5 : index
    %c0_10 = arith.constant 0 : index
    %c0_11 = arith.constant 0 : index
    %14 = vector.load %arg1[%c5, %c0_10, %c0_11] : memref<8x2x1024xf32, #tpu.memory_space<vmem>>, vector<1x2x1024xf32>
    %15 = vector.shape_cast %14 : vector<1x2x1024xf32> to vector<2x1024xf32>
    %16 = arith.addf %13, %15 : vector<2x1024xf32>
    %c6 = arith.constant 6 : index
    %c0_12 = arith.constant 0 : index
    %c0_13 = arith.constant 0 : index
    %17 = vector.load %arg1[%c6, %c0_12, %c0_13] : memref<8x2x1024xf32, #tpu.memory_space<vmem>>, vector<1x2x1024xf32>
    %18 = vector.shape_cast %17 : vector<1x2x1024xf32> to vector<2x1024xf32>
    %19 = arith.addf %16, %18 : vector<2x1024xf32>
    %c7 = arith.constant 7 : index
    %c0_14 = arith.constant 0 : index
    %c0_15 = arith.constant 0 : index
    %20 = vector.load %arg1[%c7, %c0_14, %c0_15] : memref<8x2x1024xf32, #tpu.memory_space<vmem>>, vector<1x2x1024xf32>
    %21 = vector.shape_cast %20 : vector<1x2x1024xf32> to vector<2x1024xf32>
    %22 = arith.addf %19, %21 : vector<2x1024xf32>
    %cst = arith.constant 1.250000e-01 : f32
    %23 = vector.broadcast %cst : f32 to vector<2x1024xf32>
    %24 = arith.mulf %22, %23 : vector<2x1024xf32>
    %25 = arith.truncf %24 : vector<2x1024xf32> to vector<2x1024xbf16>
    %c0_16 = arith.constant 0 : index
    %c0_17 = arith.constant 0 : index
    %26 = vector.load %arg2[%c0_16, %c0_17] : memref<1024x256xbf16, #tpu.memory_space<vmem>>, vector<1024x256xbf16>
    %cst_18 = arith.constant dense<0.000000e+00> : vector<2x256xf32>
    %27 = tpu.matmul %25, %26, %cst_18 {dimension_numbers = #tpu.dot_dimension_numbers<[1], [0], [0], [1], [0, 0, 1, 1], [], []>} : vector<2x1024xbf16>, vector<1024x256xbf16>, vector<2x256xf32> -> vector<2x256xf32>
    %c0_19 = arith.constant 0 : index
    %c0_20 = arith.constant 0 : index
    %28 = vector.load %arg3[%c0_19, %c0_20] : memref<1x256xf32, #tpu.memory_space<vmem>>, vector<1x256xf32>
    %29 = vector.broadcast %28 : vector<1x256xf32> to vector<2x256xf32>
    %30 = arith.addf %27, %29 : vector<2x256xf32>
    %31 = tpu.iota {dimensions = array<i32: 1>} : vector<2x256xi32>
    %c200_i32 = arith.constant 200 : i32
    %32 = vector.broadcast %c200_i32 : i32 to vector<2x256xi32>
    %33 = arith.cmpi slt, %31, %32 : vector<2x256xi32>
    %cst_21 = arith.constant -1.000000e+30 : f32
    %34 = vector.broadcast %cst_21 : f32 to vector<2x256xf32>
    %35 = arith.select %33, %30, %34 : vector<2x256xi1>, vector<2x256xf32>
    %cst_22 = arith.constant dense<0xFF800000> : vector<2xf32>
    %36 = vector.multi_reduction <maximumf>, %35, %cst_22 [1] : vector<2x256xf32> to vector<2xf32>
    %37 = vector.shape_cast %36 : vector<2xf32> to vector<2x1xf32>
    %38 = vector.broadcast %37 : vector<2x1xf32> to vector<2x256xf32>
    %39 = arith.subf %35, %38 : vector<2x256xf32>
    %40 = math.exp %39 : vector<2x256xf32>
    %cst_23 = arith.constant dense<0.000000e+00> : vector<2xf32>
    %41 = vector.multi_reduction <add>, %40, %cst_23 [1] : vector<2x256xf32> to vector<2xf32>
    %42 = vector.shape_cast %41 : vector<2xf32> to vector<2x1xf32>
    %43 = vector.broadcast %42 : vector<2x1xf32> to vector<2x256xf32>
    %44 = arith.divf %40, %43 : vector<2x256xf32>
    %c0_24 = arith.constant 0 : index
    %c0_25 = arith.constant 0 : index
    %45 = vector.load %arg4[%c0_24, %c0_25] : memref<2x256xf32, #tpu.memory_space<vmem>>, vector<2x256xf32>
    %cst_26 = arith.constant -1.000000e+30 : f32
    %46 = vector.broadcast %cst_26 : f32 to vector<2x256xf32>
    %47 = arith.select %33, %45, %46 : vector<2x256xi1>, vector<2x256xf32>
    %cst_27 = arith.constant dense<0xFF800000> : vector<2xf32>
    %48 = vector.multi_reduction <maximumf>, %47, %cst_27 [1] : vector<2x256xf32> to vector<2xf32>
    %49 = vector.shape_cast %48 : vector<2xf32> to vector<2x1xf32>
    %50 = vector.broadcast %49 : vector<2x1xf32> to vector<2x256xf32>
    %51 = arith.subf %47, %50 : vector<2x256xf32>
    %52 = math.exp %51 : vector<2x256xf32>
    %cst_28 = arith.constant dense<0.000000e+00> : vector<2xf32>
    %53 = vector.multi_reduction <add>, %52, %cst_28 [1] : vector<2x256xf32> to vector<2xf32>
    %54 = vector.shape_cast %53 : vector<2xf32> to vector<2x1xf32>
    %55 = vector.broadcast %54 : vector<2x1xf32> to vector<2x256xf32>
    %56 = arith.divf %52, %55 : vector<2x256xf32>
    %57 = arith.addf %44, %56 : vector<2x256xf32>
    %c0_29 = arith.constant 0 : index
    %c0_30 = arith.constant 0 : index
    %58 = vector.load %arg5[%c0_29, %c0_30] : memref<2x256xf32, #tpu.memory_space<vmem>>, vector<2x256xf32>
    tpu.vector_store %arg5[%c0_29, %c0_30], %57 {strides = array<i32>} : memref<2x256xf32, #tpu.memory_space<vmem>>, vector<2x256xf32>,
    return
  }
  func.func @transform_0(%arg0: i32) -> (i32, i32, i32) {
    %c0_i32 = arith.constant 0 : i32
    %c0_i32_0 = arith.constant 0 : i32
    %c0_i32_1 = arith.constant 0 : i32
    return %c0_i32, %arg0, %c0_i32_0 : i32, i32, i32
  }
  func.func @transform_1(%arg0: i32) -> (i32, i32) {
    %c0_i32 = arith.constant 0 : i32
    %c0_i32_0 = arith.constant 0 : i32
    %c0_i32_1 = arith.constant 0 : i32
    return %c0_i32, %c0_i32_0 : i32, i32
  }
  func.func @transform_2(%arg0: i32) -> (i32, i32) {
    %c0_i32 = arith.constant 0 : i32
    %c0_i32_0 = arith.constant 0 : i32
    %c0_i32_1 = arith.constant 0 : i32
    return %c0_i32, %c0_i32_0 : i32, i32
  }
  func.func @transform_3(%arg0: i32) -> (i32, i32) {
    %c0_i32 = arith.constant 0 : i32
    %c0_i32_0 = arith.constant 0 : i32
    return %arg0, %c0_i32 : i32, i32
  }
  func.func @transform_4(%arg0: i32) -> (i32, i32) {
    %c0_i32 = arith.constant 0 : i32
    %c0_i32_0 = arith.constant 0 : i32
    return %arg0, %c0_i32 : i32, i32
  }
}

</mosaic_0001>

<bundles_post_ra>
// kernel: ge.15
= control target key start
LH: loop header
LB: loop body
LE: loop exit
PB: predicated region body
PF: predicated region fallthrough
CT: control target
= control target key end

     0   :  { %vm12_vm0 = vcmask 130048   ;;  %s78_s10 = smov 80   ;;  %s79_s15 = smov 96   ;;  %s136_s0 = inlined_call_operand.vmem [shape: f32[2,256], index: 0, kind: input, shape index: {}]   ;;  %s137_s1 = inlined_call_operand.vmem [shape: f32[2,16,16], index: 1, kind: output, shape index: {}]  }
   0x1   :  { %v61_v0 = vld [vmem:[%s136_s0 + $0x2] sm:$0x3]  ;;  %v9_v1 = vld [vmem:[%s136_s0] sm:$0x3]  ;;  %s77_s0 = smov 112   ;;  %s80_s16 = smov 64  }
   0x2   :  { %8 = vst [vmem:[#allocation0 + $0x8] sm:$0x3] %v61_v0  ;;  %10 = vst [vmem:[#allocation0] sm:$0x3] %v9_v1  ;;  %s81_s17 = smov 48   ;;  %s82_s18 = smov 32  }
   0x3   :  { %s83_s19 = smov 16  }
   0x9   :  { %v19_v2 = vld.sshfl [vmem:[#allocation0] sm:$0xff pattern:$0x99999180]  }
   0xa   :  { %v11_v3 = vld [vmem:[#allocation0] sm:$0x3]   ;;  %20 = vrot.lane.b32.xlu0 %v19_v2, %s77_s0  ;;  %32 = vrot.lane.b32.xlu1 %v19_v2, %s78_s10  ;;  %v15_v4 = vld [vmem:[#allocation0 + $0x8] sm:$0x3]  }
   0xb   :  { %13 = vst.msk [vmem:[%s137_s1] ss:$16 sm:$0x3] %vm12_vm0, %v11_v3   ;;  %62 = vst.msk [vmem:[%s137_s1 + $0x8] ss:$16 sm:$0x3] %vm12_vm0, %v15_v4  }
   0xe   :  { %26 = vrot.lane.b32.xlu0 %v19_v2, %s79_s15  ;;  %38 = vrot.lane.b32.xlu1 %v19_v2, %s80_s16 }
  0x12   :  { %44 = vrot.lane.b32.xlu0 %v19_v2, %s81_s17  ;;  %50 = vrot.lane.b32.xlu1 %v19_v2, %s82_s18 }
  0x16   :  { %56 = vrot.lane.b32.xlu0 %v19_v2, %s83_s19 }
  0x7c   :  { %v21_v5 = vpop.permute.xlu0 %20   ;;  %v33_v6 = vpop.permute.xlu1 %32  }
  0x7d   :  { %63 = vst.msk [vmem:[%s137_s1 + $0x1] ss:$8 sm:$0xf] %vm12_vm0, %v21_v5   ;;  %65 = vst.msk [vmem:[%s137_s1 + $0x3] ss:$8 sm:$0xf] %vm12_vm0, %v33_v6  }
  0x80   :  { %v27_v7 = vpop.permute.xlu0 %26   ;;  %v39_v8 = vpop.permute.xlu1 %38  }
  0x81   :  { %64 = vst.msk [vmem:[%s137_s1 + $0x2] ss:$8 sm:$0xf] %vm12_vm0, %v27_v7   ;;  %66 = vst.msk [vmem:[%s137_s1 + $0x4] ss:$8 sm:$0xf] %vm12_vm0, %v39_v8  }
  0x84   :  { %v45_v9 = vpop.permute.xlu0 %44   ;;  %v51_v10 = vpop.permute.xlu1 %50  }
  0x85   :  { %67 = vst.msk [vmem:[%s137_s1 + $0x5] ss:$8 sm:$0xf] %vm12_vm0, %v45_v9   ;;  %68 = vst.msk [vmem:[%s137_s1 + $0x6] ss:$8 sm:$0xf] %vm12_vm0, %v51_v10  }
  0x88   :  { %v57_v11 = vpop.permute.xlu0 %56  }
  0x89   :  { %69 = vst.msk [vmem:[%s137_s1 + $0x7] ss:$8 sm:$0xf] %vm12_vm0, %v57_v11  }

// kernel: ensemble_forward.5
= control target key start
LH: loop header
LB: loop body
LE: loop exit
PB: predicated region body
PF: predicated region fallthrough
CT: control target
= control target key end

     0   :  { %s964_s12 = smov 0   ;;  %s966_s13 = smov 0   ;;  %s1104_s0 = inlined_call_operand.vmem [shape: bf16[4,3,256], index: 0, kind: input, shape index: {}]   ;;  %s1105_s1 = inlined_call_operand.vmem [shape: bf16[64,3], index: 1, kind: input, shape index: {}]   ;;  %s1106_s2 = inlined_call_operand.vmem [shape: f32[4,32,32], index: 2, kind: output, shape index: {0}]   ;;  %s1107_s3 = inlined_call_operand.vmem [shape: f32[4,1,256], index: 3, kind: output, shape index: {1}]  }
   0x1   :  { %s968_s14 = smov 0  }
   0x2 LB: > { %s26_s15 = sadd.s32 1, %s933_s13  ;;  %p777_p0 = scmp.ge.s32.totalorder %s937_s14, 1  ;;  %s937_s14 = sphi %s968_s14, %s14_s14   ;;  %s933_s13 = sphi %s966_s13, %s1109_s13   ;;  %s929_s12 = sphi %s964_s12, %s1108_s12  }
   0x3   : > { %p28_p1 = scmp.ge.s32.totalorder %s26_s15, 4  ;;  %p161_p2 = scmp.lt.s32.totalorder %s937_s14, 5 }
   0x5   : > { %s1111_s15 = smov (%p28_p1, %s26_s15), 0  ;;  %p162_p3 = pnand %p777_p0, %p161_p2 }
   0x6   : > { %p198_p4 = scmp.lt.s32.totalorder (!%p162_p3), %s929_s12, 3 }
   0x7   : > { %165 = sbr.rel (%p162_p3) target bundleno = 386 (0x182), region = 28 }
   0xc   : > { %v805_v0 = vld [vmem:[%s1105_s1 + $0x18] sm:$0xff]   ;;  %v804_v1 = vld [vmem:[%s1105_s1 + $0x10] sm:$0xff]   ;;  %v939_v2 = vmov 2   ;;  %v940_v3 = vmov 0   ;;  %v941_v10 = vmov 1   ;;  %v788_v11 = vld [vmem:[%s1105_s1] sm:$0xff]   ;;  %v289_v20 = vlaneseq }
   0xd   : > { %855 = vset.pattern.permute.xlu1 %v939_v2  ;;  %843 = vset.pattern.permute.xlu0 %v940_v3  ;;  %v801_v4 = vunpack.c.l.bf16 %v805_v0  ;;  %v802_v5 = vunpack.c.h.bf16 %v805_v0  ;;  %v797_v6 = vunpack.c.l.bf16 %v804_v1  ;;  %v798_v7 = vunpack.c.h.bf16 %v804_v1  ;;  %v803_v12 = vld [vmem:[%s1105_s1 + $0x8] sm:$0xff]   ;;  %s1113_s12 = smov (!%p198_p4, %s929_s12), 3 }
   0xe   : > { %v789_v13 = vunpack.c.l.bf16 %v788_v11  ;;  %v793_v14 = vunpack.c.l.bf16 %v803_v12  ;;  %v790_v16 = vunpack.c.h.bf16 %v788_v11  ;;  %v794_v17 = vunpack.c.h.bf16 %v803_v12  ;;  %s785_s24 = sshll.u32 %s1113_s12, 2  ;;  %s782_s28 = sshll.u32 %s1113_s12, 1 }
   0xf   : > { %v856_v8 = vpack.i.bf16 %v801_v4, %v802_v5  ;;  %v862_v9 = vpack.i.bf16 %v797_v6, %v798_v7  ;;  %vm225_vm0 = vcmask 261120   ;;  %v942_v19 = vmov 0.0   ;;  %s205_s27 = scalar_lea.vmem %s1104_s0, %s785_s24  ;;  %s219_s4 = scalar_lea.vmem %s1107_s3, %s782_s28 }
  0x10   : > { %v891_v15 = vpack.i.bf16 %v793_v14, %v789_v13  ;;  %v903_v18 = vpack.i.bf16 %v794_v17, %v790_v16  ;;  %226 = vst.msk [vmem:[#allocation2] sm:$0xff] %vm225_vm0, %v942_v19  ;;  %227 = vst.msk [vmem:[#allocation2 + $0x8] sm:$0xff] %vm225_vm0, %v942_v19  ;;  %v1009_v21 = vshrl.u32 %v289_v20, 7  ;;  %v230_v22 = vld [vmem:[%s205_s27] sm:$0xf]  ;;  %vm641_vm1 = vcmp.lt.s32.totalorder %v289_v20, 256 }
  0x11   : > { %857 = vperm.xlu1 %855, %v856_v8   ;;  %845 = vperm.xlu0 %843, %v856_v8   ;;  %228 = vst.msk [vmem:[#allocation2 + $0x10] sm:$0xff] %vm225_vm0, %v942_v19  ;;  %229 = vst.msk [vmem:[#allocation2 + $0x18] sm:$0xff] %vm225_vm0, %v942_v19  ;;  %v231_v26 = vunpack.c.l.bf16 %v230_v22  ;;  %s786_s5 = sshll.u32 %s1113_s12, 5 }
  0x12   : > { %v291_v23 = vsub.s32 0, %v1009_v21  ;;  %v295_v24 = vsub.s32 4, %v1009_v21  ;;  %v439_v25 = vsub.s32 2, %v1009_v21  ;;  %v443_v27 = vsub.s32 6, %v1009_v21  ;;  %s211_s8 = scalar_lea.vmem %s1106_s2, %s786_s5 }
  0x13   : > { %v357_v28 = vsub.s32 1, %v1009_v21  ;;  %v361_v29 = vsub.s32 5, %v1009_v21 }
  0x14   : > { %v292_v30 = vrot.slane %v231_v26, %v291_v23  ;;  %v296_v31 = vrot.slane %v231_v26, %v295_v24  ;;  %v440_v32 = vrot.slane %v231_v26, %v439_v25  ;;  %v444_v34 = vrot.slane %v231_v26, %v443_v27 }
  0x15   : > { %861 = vset.pattern.permute.xlu1 %v940_v3  ;;  %849 = vset.pattern.permute.xlu0 %v941_v10  ;;  %v358_v36 = vrot.slane %v231_v26, %v357_v28  ;;  %v362_v37 = vrot.slane %v231_v26, %v361_v29 }
  0x16   : > { %851 = vperm.xlu0 %849, %v856_v8   ;;  %863 = vperm.xlu1 %861, %v862_v9   ;;  %v1017_v40 = vrot.slane %v292_v30, %v291_v23  ;;  %v1019_v41 = vrot.slane %v296_v31, %v291_v23  ;;  %v1021_v43 = vrot.slane %v440_v32, %v439_v25 }
  0x17   : > { %v1023_v44 = vrot.slane %v444_v34, %v439_v25  ;;  %v1025_v45 = vrot.slane %v358_v36, %v357_v28  ;;  %v1027_v46 = vrot.slane %v362_v37, %v357_v28 }
  0x1a   : > { %867 = vset.pattern.permute.xlu1 %v941_v10  ;;  %873 = vset.pattern.permute.xlu0 %v939_v2 }
  0x1b   : > { %869 = vperm.xlu1 %867, %v862_v9   ;;  %875 = vperm.xlu0 %873, %v862_v9  }
  0x1f   : > { %879 = vset.pattern.permute.xlu1 %v940_v3  ;;  %892 = vperm.xlu0 %873, %v891_v15  }
  0x20   : > { %881 = vperm.xlu1 %879, %v891_v15  }
  0x23   : > { %902 = vset.pattern.permute.xlu0 %v941_v10 }
  0x24   : > { %885 = vset.pattern.permute.xlu1 %v941_v10  ;;  %904 = vperm.xlu0 %902, %v903_v18  }
  0x25   : > { %887 = vperm.xlu1 %885, %v891_v15  }
  0x28   : > { %914 = vset.pattern.permute.xlu0 %v939_v2 }
  0x29   : > { %896 = vset.pattern.permute.xlu1 %v940_v3 }
  0x2a   : > { %898 = vperm.xlu1 %896, %v903_v18  }
  0x2e   : > { %908 = vset.pattern.permute.xlu1 %v939_v2 }
  0x2f   : > { %910 = vperm.xlu1 %908, %v903_v18  }
  0x8c   : > { %v858_v33 = vpop.permute.xlu1 %857  ;;  %v846_v35 = vpop.permute.xlu0 %845 }
  0x8d   : > { %v848_v38 = vunpack.i.h.bf16 %v846_v35  ;;  %v847_v39 = vunpack.i.l.bf16 %v846_v35  ;;  %v860_v42 = vunpack.i.h.bf16 %v858_v33  ;;  %v859_v47 = vunpack.i.l.bf16 %v858_v33 }
  0x8f   : > { %v319_v48 = vmul.f32 %v848_v38, %v1017_v40  ;;  %v320_v49 = vmul.f32 %v848_v38, %v1019_v41  ;;  %v321_v50 = vmul.f32 %v847_v39, %v1017_v40  ;;  %v322_v53 = vmul.f32 %v847_v39, %v1019_v41 }
  0x90   : > { %v467_v57 = vmul.f32 %v860_v42, %v1021_v43  ;;  %v468_v63 = vmul.f32 %v860_v42, %v1023_v44  ;;  %v469_v0 = vmul.f32 %v859_v47, %v1021_v43  ;;  %v470_v1 = vmul.f32 %v859_v47, %v1023_v44 }
  0x91   : > { %v852_v51 = vpop.permute.xlu0 %851  ;;  %v864_v52 = vpop.permute.xlu1 %863 }
  0x92   : > { %v854_v54 = vunpack.i.h.bf16 %v852_v51  ;;  %v853_v55 = vunpack.i.l.bf16 %v852_v51  ;;  %v866_v56 = vunpack.i.h.bf16 %v864_v52  ;;  %v865_v58 = vunpack.i.l.bf16 %v864_v52 }
  0x94   : > { %v385_v59 = vmul.f32 %v854_v54, %v1025_v45  ;;  %v386_v60 = vmul.f32 %v854_v54, %v1027_v46  ;;  %v387_v61 = vmul.f32 %v853_v55, %v1025_v45  ;;  %v388_v62 = vmul.f32 %v853_v55, %v1027_v46 }
  0x95   : > { %v315_v2 = vmul.f32 %v866_v56, %v1017_v40  ;;  %v316_v13 = vmul.f32 %v866_v56, %v1019_v41  ;;  %v317_v14 = vmul.f32 %v865_v58, %v1017_v40  ;;  %v318_v17 = vmul.f32 %v865_v58, %v1019_v41 }
  0x96   : > { %v401_v3 = vadd.f32 %v385_v59, %v319_v48  ;;  %v402_v4 = vadd.f32 %v386_v60, %v320_v49  ;;  %v870_v5 = vpop.permute.xlu1 %869  ;;  %v876_v6 = vpop.permute.xlu0 %875  ;;  %v404_v7 = vadd.f32 %v388_v62, %v322_v53  ;;  %v403_v8 = vadd.f32 %v387_v61, %v321_v50 }
  0x97   : > { %v872_v9 = vunpack.i.h.bf16 %v870_v5  ;;  %v871_v10 = vunpack.i.l.bf16 %v870_v5  ;;  %v878_v11 = vunpack.i.h.bf16 %v876_v6  ;;  %v877_v12 = vunpack.i.l.bf16 %v876_v6 }
  0x98   : > { %v486_v15 = vadd.f32 %v470_v1, %v404_v7  ;;  %v485_v16 = vadd.f32 %v469_v0, %v403_v8  ;;  %v484_v25 = vadd.f32 %v468_v63, %v402_v4  ;;  %v483_v27 = vadd.f32 %v467_v57, %v401_v3 }
  0x99   : > { %v381_v18 = vmul.f32 %v872_v9, %v1025_v45  ;;  %v383_v19 = vmul.f32 %v871_v10, %v1025_v45  ;;  %v384_v22 = vmul.f32 %v871_v10, %v1027_v46  ;;  %v382_v23 = vmul.f32 %v872_v9, %v1027_v46 }
  0x9a   : > { %v463_v24 = vmul.f32 %v878_v11, %v1021_v43  ;;  %v893_v26 = vpop.permute.xlu0 %892  ;;  %v464_v29 = vmul.f32 %v878_v11, %v1023_v44  ;;  %v465_v30 = vmul.f32 %v877_v12, %v1021_v43  ;;  %v466_v31 = vmul.f32 %v877_v12, %v1023_v44 }
  0x9b   : > { %v400_v28 = vadd.f32 %v384_v22, %v318_v17  ;;  %v882_v32 = vpop.permute.xlu1 %881  ;;  %v502_v35 = vmax.f32 %v486_v15, 0.0  ;;  %v501_v36 = vmax.f32 %v485_v16, 0.0  ;;  %v397_v37 = vadd.f32 %v381_v18, %v315_v2 }
  0x9c   : > { %v884_v33 = vunpack.i.h.bf16 %v882_v32  ;;  %v883_v34 = vunpack.i.l.bf16 %v882_v32  ;;  %v399_v38 = vadd.f32 %v383_v19, %v317_v14  ;;  %v895_v39 = vunpack.i.h.bf16 %v893_v26 }
  0x9d   : > { %v894_v42 = vunpack.i.l.bf16 %v893_v26  ;;  %v398_v47 = vadd.f32 %v382_v23, %v316_v13  ;;  %531 = vmatprep.subr.mxu0 %v502_v35  ;;  %v500_v50 = vmax.f32 %v484_v25, 0.0  ;;  %806 = vmatprep.subr.mxu1 %v502_v35  ;;  %v499_v54 = vmax.f32 %v483_v27, 0.0 }
  0x9e   : > { %v307_v48 = vmul.f32 %v883_v34, %v1017_v40  ;;  %v308_v49 = vmul.f32 %v883_v34, %v1019_v41  ;;  %v311_v51 = vmul.f32 %v884_v33, %v1017_v40  ;;  %v312_v52 = vmul.f32 %v884_v33, %v1019_v41  ;;  %532 = vmatpush1.xpose.msra.mxu0 %v501_v36 }
  0x9f   : > { %v455_v53 = vmul.f32 %v894_v42, %v1021_v43  ;;  %v905_v55 = vpop.permute.xlu0 %904  ;;  %810 = vmatpush1.xpose.msra.mxu1 %v501_v36  ;;  %533 = vmatprep.subr.mxu0 %v500_v50  ;;  %v456_v56 = vmul.f32 %v894_v42, %v1023_v44  ;;  %v482_v58 = vadd.f32 %v466_v31, %v400_v28 }
  0xa0   : > { %v888_v57 = vpop.permute.xlu1 %887  ;;  %v907_v59 = vunpack.i.h.bf16 %v905_v55  ;;  %v906_v60 = vunpack.i.l.bf16 %v905_v55  ;;  %807 = vmatprep.subr.mxu1 %v500_v50  ;;  %v459_v61 = vmul.f32 %v895_v39, %v1021_v43  ;;  %v481_v0 = vadd.f32 %v465_v30, %v399_v38 }
  0xa1   : > { %v890_v62 = vunpack.i.h.bf16 %v888_v57  ;;  %v889_v63 = vunpack.i.l.bf16 %v888_v57  ;;  %v460_v1 = vmul.f32 %v895_v39, %v1023_v44  ;;  %v498_v2 = vmax.f32 %v482_v58, 0.0 }
  0xa2   : > { %v375_v3 = vmul.f32 %v906_v60, %v1025_v45  ;;  %v480_v4 = vadd.f32 %v464_v29, %v398_v47  ;;  %534 = vmatpush1.xpose.msra.mxu0 %v499_v54  ;;  %v376_v9 = vmul.f32 %v906_v60, %v1027_v46  ;;  %v379_v10 = vmul.f32 %v907_v59, %v1025_v45 }
  0xa3   : > { %v373_v5 = vmul.f32 %v889_v63, %v1025_v45  ;;  %v374_v6 = vmul.f32 %v889_v63, %v1027_v46  ;;  %v377_v7 = vmul.f32 %v890_v62, %v1025_v45  ;;  %v378_v8 = vmul.f32 %v890_v62, %v1027_v46  ;;  %811 = vmatpush1.xpose.msra.mxu1 %v499_v54 }
  0xa4   : > { %535 = vmatprep.subr.mxu0 %v498_v2  ;;  %v497_v11 = vmax.f32 %v481_v0, 0.0  ;;  %v479_v12 = vadd.f32 %v463_v24, %v397_v37  ;;  %808 = vmatprep.subr.mxu1 %v498_v2  ;;  %v380_v18 = vmul.f32 %v907_v59, %v1027_v46  ;;  %v496_v23 = vmax.f32 %v480_v4, 0.0 }
  0xa5   : > { %v389_v13 = vadd.f32 %v373_v5, %v307_v48  ;;  %v393_v14 = vadd.f32 %v377_v7, %v311_v51  ;;  %v899_v15 = vpop.permute.xlu1 %898  ;;  %v390_v16 = vadd.f32 %v374_v6, %v308_v49  ;;  %v394_v17 = vadd.f32 %v378_v8, %v312_v52 }
  0xa6   : > { %v901_v19 = vunpack.i.h.bf16 %v899_v15  ;;  %v900_v22 = vunpack.i.l.bf16 %v899_v15  ;;  %536 = vmatpush1.xpose.msra.mxu0 %v497_v11  ;;  %v495_v46 = vmax.f32 %v479_v12, 0.0  ;;  %v943_v4 = vmov 1966171168  }
  0xa7   : > { %v472_v25 = vadd.f32 %v456_v56, %v390_v16  ;;  %v476_v26 = vadd.f32 %v460_v1, %v394_v17  ;;  %v471_v27 = vadd.f32 %v455_v53, %v389_v13  ;;  %v475_v28 = vadd.f32 %v459_v61, %v393_v14  ;;  %812 = vmatpush1.xpose.msra.mxu1 %v497_v11 }
  0xa8   : > { %v309_v45 = vmul.f32 %v900_v22, %v1017_v40  ;;  %v310_v24 = vmul.f32 %v900_v22, %v1019_v41  ;;  %v313_v29 = vmul.f32 %v901_v19, %v1017_v40  ;;  %v314_v30 = vmul.f32 %v901_v19, %v1019_v41  ;;  %537 = vmatprep.subr.mxu0 %v496_v23  ;;  %v503_v19 = vld [vmem:[#allocation2] sm:$0xff]  ;;  %v505_v22 = vld [vmem:[#allocation2 + $0x10] sm:$0xff] }
  0xa9   : > { %809 = vmatprep.subr.mxu1 %v496_v23  ;;  %v488_v31 = vmax.f32 %v472_v25, 0.0  ;;  %v492_v32 = vmax.f32 %v476_v26, 0.0  ;;  %v487_v34 = vmax.f32 %v471_v27, 0.0  ;;  %v491_v38 = vmax.f32 %v475_v28, 0.0 }
  0xaa   : > { %v911_v33 = vpop.permute.xlu1 %910  ;;  %v391_v35 = vadd.f32 %v375_v3, %v309_v45  ;;  %538 = vmatpush1.xpose.msra.mxu0 %v495_v46  ;;  %v392_v39 = vadd.f32 %v376_v9, %v310_v24  ;;  %v395_v42 = vadd.f32 %v379_v10, %v313_v29  ;;  %v396_v47 = vadd.f32 %v380_v18, %v314_v30  ;;  %v504_v45 = vld [vmem:[#allocation2 + $0x8] sm:$0xff]  ;;  %v506_v24 = vld [vmem:[#allocation2 + $0x18] sm:$0xff] }
  0xab   : > { %v913_v36 = vunpack.i.h.bf16 %v911_v33  ;;  %v912_v37 = vunpack.i.l.bf16 %v911_v33  ;;  %571 = vmatprep.mubr.f32.mxu0 %v488_v31  ;;  %813 = vmatpush1.xpose.msra.mxu1 %v495_v46  ;;  %v625_v5 = vunpack.c.l.s4 %v943_v4 }
  0xac   : > { %581 = vmatprep.mubr.f32.mxu1 %v492_v32 }
  0xad   : > { %v457_v40 = vmul.f32 %v912_v37, %v1021_v43  ;;  %v458_v41 = vmul.f32 %v912_v37, %v1023_v44  ;;  %v461_v48 = vmul.f32 %v913_v36, %v1021_v43  ;;  %v462_v49 = vmul.f32 %v913_v36, %v1023_v44  ;;  %572 = vmatmul.mubr.f32.vlgmr.msra.gmra.mxu0 %v487_v34 }
  0xae   : > { %582 = vmatmul.mubr.f32.vlgmr.msra.gmra.mxu1 %v491_v38  ;;  %v626_v10 = vunpack.c.0.s8 %v625_v5 }
  0xaf   : > { %v474_v50 = vadd.f32 %v458_v41, %v392_v39  ;;  %v478_v51 = vadd.f32 %v462_v49, %v396_v47  ;;  %v473_v52 = vadd.f32 %v457_v40, %v391_v35  ;;  %v477_v53 = vadd.f32 %v461_v48, %v395_v42 }
  0xb0   : > { %v629_v15 = vsub.s32 %v626_v10, %v1009_v21 }
  0xb1   : > { %v490_v54 = vmax.f32 %v474_v50, 0.0  ;;  %v494_v55 = vmax.f32 %v478_v51, 0.0  ;;  %v489_v56 = vmax.f32 %v473_v52, 0.0  ;;  %v493_v57 = vmax.f32 %v477_v53, 0.0 }
  0xb3   : > { %v610_v58 = vadd.f32 %v490_v54, %v488_v31  ;;  %576 = vmatprep.mubr.f32.mxu0 %v490_v54  ;;  %586 = vmatprep.mubr.f32.mxu1 %v494_v55  ;;  %v601_v59 = vadd.f32 %v489_v56, %v487_v34 }
  0xb4   : > { %577 = vmatmul.mubr.f32.gmra.mxu0 %v489_v56  ;;  %587 = vmatmul.mubr.f32.gmra.mxu1 %v493_v57 }
  0xb5   : > { %v611_v60 = vadd.f32 %v610_v58, %v492_v32  ;;  %v602_v43 = vadd.f32 %v601_v59, %v491_v38 }
  0xb7   : > { %v612_v61 = vadd.f32 %v611_v60, %v494_v55  ;;  %v603_v44 = vadd.f32 %v602_v43, %v493_v57 }
  0xb9   : > { %v613_v62 = vrot.slane %v612_v61, 4  ;;  %v604_v63 = vrot.slane %v603_v44, 4 }
  0xbb   : > { %v614_v0 = vadd.f32 %v613_v62, %v612_v61  ;;  %v605_v1 = vadd.f32 %v604_v63, %v603_v44 }
  0xbd   : > { %v615_v2 = vrot.slane %v614_v0, 2  ;;  %v606_v3 = vrot.slane %v605_v1, 2 }
  0xbf   : > { %v616_v6 = vadd.f32 %v615_v2, %v614_v0  ;;  %v607_v7 = vadd.f32 %v606_v3, %v605_v1 }
  0xc1   : > { %v617_v8 = vrot.slane %v616_v6, 1  ;;  %v608_v9 = vrot.slane %v607_v7, 1 }
  0xc3   : > { %v618_v11 = vadd.f32 %v617_v8, %v616_v6  ;;  %v609_v12 = vadd.f32 %v608_v9, %v607_v7 }
  0xc5   : > { %v620_v13 = vmul.f32 0.03125, %v618_v11  ;;  %v619_v14 = vmul.f32 0.03125, %v609_v12 }
  0xc7   : > { %v623_v16 = vcombine.low %v619_v14, %v620_v13 }
  0xc9   : > { %v630_v17 = vrot.slane %v623_v16, %v629_v15 }
  0xcb   : > { %v637_v18 = vrot.slane %v630_v17, %v629_v15 }
  0xcd   : > { %643 = vst.msk [vmem:[%s219_s4] sm:$0x3] %vm641_vm1, %v637_v18 }
 0x16d   : > { %v573_v23 = vpop.f32.mrf.mxu0 }
 0x16e   : > { %v592_v25 = vadd.f32 %v573_v23, %v503_v19  ;;  %v583_v26 = vpop.f32.mrf.mxu1 }
 0x16f   : > { %v594_v27 = vadd.f32 %v583_v26, %v505_v22  ;;  %v575_v28 = vpop.f32.mrf.mxu0 }
 0x170   : > { %597 = vst.msk [vmem:[#allocation2] sm:$0xff] %vm225_vm0, %v592_v25  ;;  %v585_v21 = vpop.f32.mrf.mxu1 }
 0x171   : > { %599 = vst.msk [vmem:[#allocation2 + $0x10] sm:$0xff] %vm225_vm0, %v594_v27 }
 0x174   : > { %v578_v29 = vpop.f32.mrf.mxu0  ;;  %v588_v30 = vpop.f32.mrf.mxu1 }
 0x175   : > { %v593_v20 = vadd.f32 %v578_v29, %v504_v45  ;;  %v595_v46 = vadd.f32 %v588_v30, %v506_v24 }
 0x176   : > { %v580_v31 = vpop.f32.mrf.mxu0  ;;  %v590_v32 = vpop.f32.mrf.mxu1 }
 0x177   : > { %598 = vst.msk [vmem:[#allocation2 + $0x8] sm:$0xff] %vm225_vm0, %v593_v20  ;;  %600 = vst.msk [vmem:[#allocation2 + $0x18] sm:$0xff] %vm225_vm0, %v595_v46  ;;  %v647_v33 = vld [vmem:[#allocation2] sm:$0xff] }
 0x178   : > { %v651_v34 = vmul.f32 0.00390625, %v647_v33  ;;  %v649_v35 = vld [vmem:[#allocation2 + $0x10] sm:$0xff] }
 0x179   : > { %v653_v36 = vmul.f32 0.00390625, %v649_v35 }
 0x17a   : > { %655 = vst.msk [vmem:[%s211_s8] sm:$0xff] %vm225_vm0, %v651_v34 }
 0x17b   : > { %657 = vst.msk [vmem:[%s211_s8 + $0x10] sm:$0xff] %vm225_vm0, %v653_v36 }
 0x17e   : > { %v648_v37 = vld [vmem:[#allocation2 + $0x8] sm:$0xff]  ;;  %v650_v38 = vld [vmem:[#allocation2 + $0x18] sm:$0xff] }
 0x17f   : > { %v652_v39 = vmul.f32 0.00390625, %v648_v37  ;;  %v654_v42 = vmul.f32 0.00390625, %v650_v38 }
 0x181   : > { %656 = vst.msk [vmem:[%s211_s8 + $0x8] sm:$0xff] %vm225_vm0, %v652_v39  ;;  %658 = vst.msk [vmem:[%s211_s8 + $0x18] sm:$0xff] %vm225_vm0, %v654_v42 }
 0x182 PF: > { %s14_s14 = sadd.s32 1, %s937_s14   ;;  %s1108_s12 = smov %s933_s13 }
 0x183   : > { %p11_p5 = scmp.ge.s32.totalorder %s14_s14, 6   ;;  %s1109_s13 = smov %s1111_s15 }
 0x185   :  { %13 = sbr.rel (!%p11_p5) target bundleno = 2 (0x2), region = 78 }

// kernel: ensemble_forward.6
= control target key start
LH: loop header
LB: loop body
LE: loop exit
PB: predicated region body
PF: predicated region fallthrough
CT: control target
= control target key end

     0   :  { %9 = vsyncpa [#allocation4], 0  ;;  %s1259_s0 = inlined_call_operand.vmem [shape: bf16[12,3,256], index: 0, kind: input, shape index: {}]   ;;  %s1260_s1 = inlined_call_operand.vmem [shape: bf16[64,3], index: 1, kind: input, shape index: {}]   ;;  %s1261_s2 = inlined_call_operand.vmem [shape: f32[12,32,32], index: 2, kind: output, shape index: {0}]   ;;  %s1262_s3 = inlined_call_operand.hbm [shape: f32[12,1,256], index: 3, kind: output, shape index: {1}]  }
   0x1   :  { %11 = vsyncpa [#allocation4 + $0x1], 0  ;;  %s1058_s12 = smov 0   ;;  %s1060_s13 = smov 0  }
   0x2   :  { %s1062_s14 = smov 0   ;;  %s1064_s15 = smov 0  }
   0x3   :  { %s1066_s16 = smov 0   ;;  %s1068_s17 = smov 0  }
   0x4 LB: > { %s777_s18 = sadd.s32 4294967295, %s1030_s17   ;;  %s778_s19 = sadd.s32 4294967294, %s1030_s17   ;;  %s1030_s17 = sphi %s1068_s17, %s17_s17   ;;  %s1026_s16 = sphi %s1066_s16, %s1269_s16   ;;  %s1022_s15 = sphi %s1064_s15, %s1268_s15   ;;  %s1018_s14 = sphi %s1062_s14, %s1267_s14   ;;  %s1014_s13 = sphi %s1060_s13, %s1266_s13   ;;  %s1010_s12 = sphi %s1058_s12, %s1265_s12  }
   0x5   : > { %s29_s20 = sadd.s32 1, %s1026_s16  ;;  %s113_s21 = sadd.s32 1, %s1018_s14 }
   0x6   : > { %p31_p0 = scmp.ge.s32.totalorder %s29_s20, 12  ;;  %p123_p1 = scmp.ne.s32.totalorder %s1018_s14, %s1014_s13 }
   0x7   : > { %p124_p2 = scmp.eq.s32.totalorder %s777_s18, 11  ;;  %p129_p3 = scmp.ne.s32.totalorder %s1014_s13, %s1010_s12 }
   0x8   : > { %s1271_s20 = smov (%p31_p0, %s29_s20), 0  ;;  %p130_p5 = scmp.eq.s32.totalorder %s778_s19, 11 }
   0x9   : > { %p1098_p4 = por %p124_p2, %p123_p1  ;;  %s108_s23 = ssub.s32 %s1026_s16, %s1271_s20 }
   0xa   : > { %p781_p6 = scmp.ge.s32.totalorder %s1030_s17, 1  ;;  %p111_p7 = scmp.eq.s32.totalorder %s108_s23, 0 }
   0xb   : > { %p1105_p8 = por %p130_p5, %p129_p3  ;;  %p164_p9 = scmp.lt.s32.totalorder %s1030_s17, 13 }
   0xc   : > { %s1111_s25 = scalar_select %p111_p7, %s1018_s14, %s113_s21  }
   0xd   : > { %p165_p10 = pnand %p781_p6, %p164_p9 }
   0xe   : > { %p198_p11 = scmp.lt.s32.totalorder (!%p165_p10), %s1022_s15, 11  ;;  %s194_s18 = sand.u32 (!%p165_p10), 1, %s1014_s13  }
   0xf   : > { %168 = sbr.rel (%p165_p10) target bundleno = 394 (0x18a), region = 28  ;;  %s782_s19 = sshll.u32 (!%p165_p10), %s194_s18, 1 }
  0x10   : > { %s196_s21 = scalar_lea.vmem (!%p165_p10), [#allocation3], %s782_s19  ;;  %s794_s23 = sshll.u32 (!%p165_p10), %s1022_s15, 5 }
  0x11   : > { %s674_s28 = scalar_lea.hbm (!%p165_p10), %s1262_s3, %s794_s23  ;;  %s676_s29 = sshll.u32 (!%p165_p10), %s196_s21, 4  ;;  %s677_s29 = int_to_ptr.vmem [resolvable:$true] %s676_s29 }
  0x12   : > { %s657_s30 = scalar_lea.sflag (!%p165_p10), [#allocation4], %s194_s18  ;;  %s954_s4 = scalar_lea.vmem (!%p165_p10), %s677_s29, 32 }
  0x13   : > { %p955_p12 = scmp.ne.s32.totalorder (!%p165_p10), %s677_s29, %s954_s4  ;;  %s1037_s5 = smov (!%p165_p10), [#allocation3]  }
  0x14   : > { %v813_v0 = vld [vmem:[%s1260_s1 + $0x18] sm:$0xff]   ;;  %v812_v1 = vld [vmem:[%s1260_s1 + $0x10] sm:$0xff]   ;;  %v1032_v2 = vmov 2   ;;  %v1033_v3 = vmov 0   ;;  %v1034_v10 = vmov 1   ;;  %v796_v11 = vld [vmem:[%s1260_s1] sm:$0xff]   ;;  %v281_v20 = vlaneseq }
  0x15   : > { %894 = vset.pattern.permute.xlu1 %v1032_v2  ;;  %882 = vset.pattern.permute.xlu0 %v1033_v3  ;;  %v809_v4 = vunpack.c.l.bf16 %v813_v0  ;;  %v810_v5 = vunpack.c.h.bf16 %v813_v0  ;;  %v805_v6 = vunpack.c.l.bf16 %v812_v1  ;;  %v806_v7 = vunpack.c.h.bf16 %v812_v1  ;;  %v811_v12 = vld [vmem:[%s1260_s1 + $0x8] sm:$0xff]   ;;  %s1131_s7 = scalar_select %p198_p11, %s1022_s15, 11 }
  0x16   : > { %v797_v13 = vunpack.c.l.bf16 %v796_v11  ;;  %v801_v14 = vunpack.c.l.bf16 %v811_v12  ;;  %v798_v16 = vunpack.c.h.bf16 %v796_v11  ;;  %v802_v17 = vunpack.c.h.bf16 %v811_v12  ;;  %p956_p13 = pnand %p955_p12, %p1098_p4  ;;  %s958_s6 = sshll.u32 %s1037_s5, 4  ;;  %s959_s6 = int_to_ptr.vmem [resolvable:$false] %s958_s6 }
  0x17   : > { %v895_v8 = vpack.i.bf16 %v809_v4, %v810_v5  ;;  %v901_v9 = vpack.i.bf16 %v805_v6, %v806_v7  ;;  %vm217_vm0 = vcmask 261120   ;;  %v1035_v19 = vmov 0.0   ;;  %s792_s8 = sshll.u32 %s1131_s7, 2  ;;  %p961_p1 = scmp.lt.s32.totalorder %s677_s29, %s959_s6 }
  0x18   : > { %v930_v15 = vpack.i.bf16 %v801_v14, %v797_v13  ;;  %v942_v18 = vpack.i.bf16 %v802_v17, %v798_v16  ;;  %218 = vst.msk [vmem:[#allocation2] sm:$0xff] %vm217_vm0, %v1035_v19  ;;  %219 = vst.msk [vmem:[#allocation2 + $0x8] sm:$0xff] %vm217_vm0, %v1035_v19  ;;  %s205_s11 = scalar_lea.vmem %s1259_s0, %s792_s8  ;;  %v1138_v21 = vshrl.u32 %v281_v20, 7  ;;  %vm633_vm1 = vcmp.lt.s32.totalorder %v281_v20, 256  ;;  %p957_p0 = pneg %p956_p13 }
  0x19   : > { %896 = vperm.xlu1 %894, %v895_v8   ;;  %884 = vperm.xlu0 %882, %v895_v8   ;;  %220 = vst.msk [vmem:[#allocation2 + $0x10] sm:$0xff] %vm217_vm0, %v1035_v19  ;;  %221 = vst.msk [vmem:[#allocation2 + $0x18] sm:$0xff] %vm217_vm0, %v1035_v19  ;;  %v222_v22 = vld [vmem:[%s205_s11] sm:$0xf]  ;;  %s960_s8 = scalar_lea.vmem %s959_s6, 64 }
  0x1a   : > { %v283_v23 = vsub.s32 0, %v1138_v21  ;;  %v287_v24 = vsub.s32 4, %v1138_v21  ;;  %v431_v25 = vsub.s32 2, %v1138_v21  ;;  %v223_v26 = vunpack.c.l.bf16 %v222_v22  ;;  %p962_p2 = scmp.lt.s32.totalorder %s960_s8, %s954_s4 }
  0x1b   : > { %v435_v27 = vsub.s32 6, %v1138_v21  ;;  %v349_v28 = vsub.s32 1, %v1138_v21  ;;  %v353_v29 = vsub.s32 5, %v1138_v21 }
  0x1c   : > { %v284_v30 = vrot.slane %v223_v26, %v283_v23  ;;  %v288_v31 = vrot.slane %v223_v26, %v287_v24  ;;  %v432_v32 = vrot.slane %v223_v26, %v431_v25  ;;  %p963_p3 = por %p962_p2, %p961_p1 }
  0x1d   : > { %900 = vset.pattern.permute.xlu1 %v1033_v3  ;;  %888 = vset.pattern.permute.xlu0 %v1034_v10  ;;  %v436_v34 = vrot.slane %v223_v26, %v435_v27  ;;  %v350_v36 = vrot.slane %v223_v26, %v349_v28  ;;  %v354_v37 = vrot.slane %v223_v26, %v353_v29 }
  0x1e   : > { %890 = vperm.xlu0 %888, %v895_v8   ;;  %902 = vperm.xlu1 %900, %v901_v9   ;;  %v1146_v40 = vrot.slane %v284_v30, %v283_v23  ;;  %v1148_v41 = vrot.slane %v288_v31, %v283_v23  ;;  %v1150_v43 = vrot.slane %v432_v32, %v431_v25  ;;  %p964_p5 = pnand %p963_p3, %p957_p0 }
  0x1f   : > { %v1152_v44 = vrot.slane %v436_v34, %v431_v25  ;;  %v1154_v45 = vrot.slane %v350_v36, %v349_v28  ;;  %v1156_v46 = vrot.slane %v354_v37, %v349_v28 }
  0x22   : > { %906 = vset.pattern.permute.xlu1 %v1034_v10  ;;  %912 = vset.pattern.permute.xlu0 %v1032_v2 }
  0x23   : > { %908 = vperm.xlu1 %906, %v901_v9   ;;  %914 = vperm.xlu0 %912, %v901_v9  }
  0x27   : > { %918 = vset.pattern.permute.xlu1 %v1033_v3  ;;  %931 = vperm.xlu0 %912, %v930_v15  }
  0x28   : > { %920 = vperm.xlu1 %918, %v930_v15  }
  0x2b   : > { %941 = vset.pattern.permute.xlu0 %v1034_v10 }
  0x2c   : > { %924 = vset.pattern.permute.xlu1 %v1034_v10  ;;  %943 = vperm.xlu0 %941, %v942_v18  }
  0x2d   : > { %926 = vperm.xlu1 %924, %v930_v15  }
  0x30   : > { %953 = vset.pattern.permute.xlu0 %v1032_v2 }
  0x31   : > { %935 = vset.pattern.permute.xlu1 %v1033_v3 }
  0x32   : > { %937 = vperm.xlu1 %935, %v942_v18  }
  0x36   : > { %947 = vset.pattern.permute.xlu1 %v1032_v2 }
  0x37   : > { %949 = vperm.xlu1 %947, %v942_v18  }
  0x94   : > { %v897_v33 = vpop.permute.xlu1 %896  ;;  %v885_v35 = vpop.permute.xlu0 %884 }
  0x95   : > { %v887_v38 = vunpack.i.h.bf16 %v885_v35  ;;  %v886_v39 = vunpack.i.l.bf16 %v885_v35  ;;  %v899_v42 = vunpack.i.h.bf16 %v897_v33  ;;  %v898_v47 = vunpack.i.l.bf16 %v897_v33 }
  0x97   : > { %v311_v48 = vmul.f32 %v887_v38, %v1146_v40  ;;  %v312_v49 = vmul.f32 %v887_v38, %v1148_v41  ;;  %v313_v50 = vmul.f32 %v886_v39, %v1146_v40  ;;  %v314_v53 = vmul.f32 %v886_v39, %v1148_v41 }
  0x98   : > { %v459_v57 = vmul.f32 %v899_v42, %v1150_v43  ;;  %v460_v63 = vmul.f32 %v899_v42, %v1152_v44  ;;  %v461_v0 = vmul.f32 %v898_v47, %v1150_v43  ;;  %v462_v1 = vmul.f32 %v898_v47, %v1152_v44 }
  0x99   : > { %v891_v51 = vpop.permute.xlu0 %890  ;;  %v903_v52 = vpop.permute.xlu1 %902 }
  0x9a   : > { %v893_v54 = vunpack.i.h.bf16 %v891_v51  ;;  %v892_v55 = vunpack.i.l.bf16 %v891_v51  ;;  %v905_v56 = vunpack.i.h.bf16 %v903_v52  ;;  %v904_v58 = vunpack.i.l.bf16 %v903_v52 }
  0x9c   : > { %v377_v59 = vmul.f32 %v893_v54, %v1154_v45  ;;  %v378_v60 = vmul.f32 %v893_v54, %v1156_v46  ;;  %v379_v61 = vmul.f32 %v892_v55, %v1154_v45  ;;  %v380_v62 = vmul.f32 %v892_v55, %v1156_v46 }
  0x9d   : > { %v307_v2 = vmul.f32 %v905_v56, %v1146_v40  ;;  %v308_v13 = vmul.f32 %v905_v56, %v1148_v41  ;;  %v309_v14 = vmul.f32 %v904_v58, %v1146_v40  ;;  %v310_v17 = vmul.f32 %v904_v58, %v1148_v41 }
  0x9e   : > { %v393_v3 = vadd.f32 %v377_v59, %v311_v48  ;;  %v394_v4 = vadd.f32 %v378_v60, %v312_v49  ;;  %v909_v5 = vpop.permute.xlu1 %908  ;;  %v915_v6 = vpop.permute.xlu0 %914  ;;  %v396_v7 = vadd.f32 %v380_v62, %v314_v53  ;;  %v395_v8 = vadd.f32 %v379_v61, %v313_v50 }
  0x9f   : > { %v911_v9 = vunpack.i.h.bf16 %v909_v5  ;;  %v910_v10 = vunpack.i.l.bf16 %v909_v5  ;;  %v917_v11 = vunpack.i.h.bf16 %v915_v6  ;;  %v916_v12 = vunpack.i.l.bf16 %v915_v6 }
  0xa0   : > { %v478_v15 = vadd.f32 %v462_v1, %v396_v7  ;;  %v477_v16 = vadd.f32 %v461_v0, %v395_v8  ;;  %v476_v25 = vadd.f32 %v460_v63, %v394_v4  ;;  %v475_v27 = vadd.f32 %v459_v57, %v393_v3 }
  0xa1   : > { %v373_v18 = vmul.f32 %v911_v9, %v1154_v45  ;;  %v375_v19 = vmul.f32 %v910_v10, %v1154_v45  ;;  %v376_v22 = vmul.f32 %v910_v10, %v1156_v46  ;;  %v374_v23 = vmul.f32 %v911_v9, %v1156_v46 }
  0xa2   : > { %v455_v24 = vmul.f32 %v917_v11, %v1150_v43  ;;  %v932_v26 = vpop.permute.xlu0 %931  ;;  %v456_v29 = vmul.f32 %v917_v11, %v1152_v44  ;;  %v457_v30 = vmul.f32 %v916_v12, %v1150_v43  ;;  %v458_v31 = vmul.f32 %v916_v12, %v1152_v44 }
  0xa3   : > { %v392_v28 = vadd.f32 %v376_v22, %v310_v17  ;;  %v921_v32 = vpop.permute.xlu1 %920  ;;  %v494_v35 = vmax.f32 %v478_v15, 0.0  ;;  %v493_v36 = vmax.f32 %v477_v16, 0.0  ;;  %v389_v37 = vadd.f32 %v373_v18, %v307_v2 }
  0xa4   : > { %v923_v33 = vunpack.i.h.bf16 %v921_v32  ;;  %v922_v34 = vunpack.i.l.bf16 %v921_v32  ;;  %v391_v38 = vadd.f32 %v375_v19, %v309_v14  ;;  %v934_v39 = vunpack.i.h.bf16 %v932_v26 }
  0xa5   : > { %v933_v42 = vunpack.i.l.bf16 %v932_v26  ;;  %v390_v47 = vadd.f32 %v374_v23, %v308_v13  ;;  %523 = vmatprep.subr.mxu0 %v494_v35  ;;  %v492_v50 = vmax.f32 %v476_v25, 0.0  ;;  %814 = vmatprep.subr.mxu1 %v494_v35  ;;  %v491_v54 = vmax.f32 %v475_v27, 0.0 }
  0xa6   : > { %v299_v48 = vmul.f32 %v922_v34, %v1146_v40  ;;  %v300_v49 = vmul.f32 %v922_v34, %v1148_v41  ;;  %v303_v51 = vmul.f32 %v923_v33, %v1146_v40  ;;  %v304_v52 = vmul.f32 %v923_v33, %v1148_v41  ;;  %524 = vmatpush1.xpose.msra.mxu0 %v493_v36 }
  0xa7   : > { %v447_v53 = vmul.f32 %v933_v42, %v1150_v43  ;;  %v944_v55 = vpop.permute.xlu0 %943  ;;  %818 = vmatpush1.xpose.msra.mxu1 %v493_v36  ;;  %525 = vmatprep.subr.mxu0 %v492_v50  ;;  %v448_v56 = vmul.f32 %v933_v42, %v1152_v44  ;;  %v474_v58 = vadd.f32 %v458_v31, %v392_v28 }
  0xa8   : > { %v927_v57 = vpop.permute.xlu1 %926  ;;  %v946_v59 = vunpack.i.h.bf16 %v944_v55  ;;  %v945_v60 = vunpack.i.l.bf16 %v944_v55  ;;  %815 = vmatprep.subr.mxu1 %v492_v50  ;;  %v451_v61 = vmul.f32 %v934_v39, %v1150_v43  ;;  %v473_v0 = vadd.f32 %v457_v30, %v391_v38 }
  0xa9   : > { %v929_v62 = vunpack.i.h.bf16 %v927_v57  ;;  %v928_v63 = vunpack.i.l.bf16 %v927_v57  ;;  %v452_v1 = vmul.f32 %v934_v39, %v1152_v44  ;;  %v490_v2 = vmax.f32 %v474_v58, 0.0 }
  0xaa   : > { %v367_v3 = vmul.f32 %v945_v60, %v1154_v45  ;;  %v472_v4 = vadd.f32 %v456_v29, %v390_v47  ;;  %526 = vmatpush1.xpose.msra.mxu0 %v491_v54  ;;  %v368_v9 = vmul.f32 %v945_v60, %v1156_v46  ;;  %v371_v10 = vmul.f32 %v946_v59, %v1154_v45 }
  0xab   : > { %v365_v5 = vmul.f32 %v928_v63, %v1154_v45  ;;  %v366_v6 = vmul.f32 %v928_v63, %v1156_v46  ;;  %v369_v7 = vmul.f32 %v929_v62, %v1154_v45  ;;  %v370_v8 = vmul.f32 %v929_v62, %v1156_v46  ;;  %819 = vmatpush1.xpose.msra.mxu1 %v491_v54 }
  0xac   : > { %527 = vmatprep.subr.mxu0 %v490_v2  ;;  %v489_v11 = vmax.f32 %v473_v0, 0.0  ;;  %v471_v12 = vadd.f32 %v455_v24, %v389_v37  ;;  %816 = vmatprep.subr.mxu1 %v490_v2  ;;  %v372_v18 = vmul.f32 %v946_v59, %v1156_v46  ;;  %v488_v23 = vmax.f32 %v472_v4, 0.0 }
  0xad   : > { %v381_v13 = vadd.f32 %v365_v5, %v299_v48  ;;  %v385_v14 = vadd.f32 %v369_v7, %v303_v51  ;;  %v938_v15 = vpop.permute.xlu1 %937  ;;  %v382_v16 = vadd.f32 %v366_v6, %v300_v49  ;;  %v386_v17 = vadd.f32 %v370_v8, %v304_v52 }
  0xae   : > { %v940_v19 = vunpack.i.h.bf16 %v938_v15  ;;  %v939_v22 = vunpack.i.l.bf16 %v938_v15  ;;  %528 = vmatpush1.xpose.msra.mxu0 %v489_v11  ;;  %v487_v46 = vmax.f32 %v471_v12, 0.0  ;;  %v1036_v4 = vmov 1966171168  }
  0xaf   : > { %v464_v25 = vadd.f32 %v448_v56, %v382_v16  ;;  %v468_v26 = vadd.f32 %v452_v1, %v386_v17  ;;  %v463_v27 = vadd.f32 %v447_v53, %v381_v13  ;;  %v467_v28 = vadd.f32 %v451_v61, %v385_v14  ;;  %820 = vmatpush1.xpose.msra.mxu1 %v489_v11 }
  0xb0   : > { %v301_v45 = vmul.f32 %v939_v22, %v1146_v40  ;;  %v302_v24 = vmul.f32 %v939_v22, %v1148_v41  ;;  %v305_v29 = vmul.f32 %v940_v19, %v1146_v40  ;;  %v306_v30 = vmul.f32 %v940_v19, %v1148_v41  ;;  %529 = vmatprep.subr.mxu0 %v488_v23 }
  0xb1   : > { %817 = vmatprep.subr.mxu1 %v488_v23  ;;  %v480_v31 = vmax.f32 %v464_v25, 0.0  ;;  %v484_v32 = vmax.f32 %v468_v26, 0.0  ;;  %v479_v34 = vmax.f32 %v463_v27, 0.0  ;;  %v483_v38 = vmax.f32 %v467_v28, 0.0 }
  0xb2   : > { %v950_v33 = vpop.permute.xlu1 %949  ;;  %v383_v35 = vadd.f32 %v367_v3, %v301_v45  ;;  %530 = vmatpush1.xpose.msra.mxu0 %v487_v46  ;;  %v384_v39 = vadd.f32 %v368_v9, %v302_v24  ;;  %v387_v42 = vadd.f32 %v371_v10, %v305_v29  ;;  %v388_v47 = vadd.f32 %v372_v18, %v306_v30 }
  0xb3   : > { %v952_v36 = vunpack.i.h.bf16 %v950_v33  ;;  %v951_v37 = vunpack.i.l.bf16 %v950_v33  ;;  %563 = vmatprep.mubr.f32.mxu0 %v480_v31  ;;  %821 = vmatpush1.xpose.msra.mxu1 %v487_v46  ;;  %v617_v5 = vunpack.c.l.s4 %v1036_v4 }
  0xb4   : > { %573 = vmatprep.mubr.f32.mxu1 %v484_v32 }
  0xb5   : > { %v449_v40 = vmul.f32 %v951_v37, %v1150_v43  ;;  %v450_v41 = vmul.f32 %v951_v37, %v1152_v44  ;;  %v453_v48 = vmul.f32 %v952_v36, %v1150_v43  ;;  %v454_v49 = vmul.f32 %v952_v36, %v1152_v44  ;;  %564 = vmatmul.mubr.f32.vlgmr.msra.gmra.mxu0 %v479_v34 }
  0xb6   : > { %574 = vmatmul.mubr.f32.vlgmr.msra.gmra.mxu1 %v483_v38  ;;  %v618_v10 = vunpack.c.0.s8 %v617_v5 }
  0xb7   : > { %v466_v50 = vadd.f32 %v450_v41, %v384_v39  ;;  %v470_v51 = vadd.f32 %v454_v49, %v388_v47  ;;  %v465_v52 = vadd.f32 %v449_v40, %v383_v35  ;;  %v469_v53 = vadd.f32 %v453_v48, %v387_v42 }
  0xb8   : > { %v621_v15 = vsub.s32 %v618_v10, %v1138_v21 }
  0xb9   : > { %v482_v54 = vmax.f32 %v466_v50, 0.0  ;;  %v486_v55 = vmax.f32 %v470_v51, 0.0  ;;  %v481_v56 = vmax.f32 %v465_v52, 0.0  ;;  %v485_v57 = vmax.f32 %v469_v53, 0.0 }
  0xbb   : > { %v602_v58 = vadd.f32 %v482_v54, %v480_v31  ;;  %568 = vmatprep.mubr.f32.mxu0 %v482_v54  ;;  %578 = vmatprep.mubr.f32.mxu1 %v486_v55  ;;  %v593_v59 = vadd.f32 %v481_v56, %v479_v34 }
  0xbc   : > { %569 = vmatmul.mubr.f32.gmra.mxu0 %v481_v56  ;;  %579 = vmatmul.mubr.f32.gmra.mxu1 %v485_v57 }
  0xbd   : > { %v603_v60 = vadd.f32 %v602_v58, %v484_v32  ;;  %v594_v43 = vadd.f32 %v593_v59, %v483_v38 }
  0xbf   : > { %v604_v61 = vadd.f32 %v603_v60, %v486_v55  ;;  %v595_v44 = vadd.f32 %v594_v43, %v485_v57 }
  0xc1   : > { %v605_v62 = vrot.slane %v604_v61, 4  ;;  %v596_v63 = vrot.slane %v595_v44, 4 }
  0xc3   : > { %v606_v0 = vadd.f32 %v605_v62, %v604_v61  ;;  %v597_v1 = vadd.f32 %v596_v63, %v595_v44 }
  0xc5   : > { %v607_v2 = vrot.slane %v606_v0, 2  ;;  %v598_v3 = vrot.slane %v597_v1, 2 }
  0xc7   : > { %v608_v6 = vadd.f32 %v607_v2, %v606_v0  ;;  %v599_v7 = vadd.f32 %v598_v3, %v597_v1 }
  0xc9   : > { %v609_v8 = vrot.slane %v608_v6, 1  ;;  %v600_v9 = vrot.slane %v599_v7, 1 }
  0xcb   : > { %v610_v11 = vadd.f32 %v609_v8, %v608_v6  ;;  %v601_v12 = vadd.f32 %v600_v9, %v599_v7 }
  0xcd   : > { %v612_v13 = vmul.f32 0.03125, %v610_v11  ;;  %v611_v14 = vmul.f32 0.03125, %v601_v12 }
  0xcf   : > { %v615_v16 = vcombine.low %v611_v14, %v612_v13 }
  0xd1   : > { %v622_v17 = vrot.slane %v615_v16, %v621_v15 }
  0xd3   : > { %v629_v18 = vrot.slane %v622_v17, %v621_v15 }
  0xd5   : > { %635 = vst.msk [vmem:[%s196_s21] sm:$0x3] %vm633_vm1, %v629_v18 }
  0xd6   : > { %967 = shalt.err (!%p964_p5)
}
  0xd7   : > { %s968_s15 = scalar_lea.hbm %s674_s28, 32  ;;  %s972_s11 = scalar_lea.hbm %s1262_s3, 384 }
  0xd8   : > { %p969_p6 = scmp.ne.s32.totalorder %s674_s28, %s968_s15  ;;  %p973_p10 = scmp.lt.s32.totalorder %s674_s28, %s1262_s3 }
  0xd9   : > { %p974_p11 = scmp.lt.s32.totalorder %s972_s11, %s968_s15 }
  0xda   : > { %p970_p7 = pnand %p969_p6, %p1098_p4 }
  0xdb   : > { %p975_p12 = por %p974_p11, %p973_p10 }
  0xdc   : > { %p971_p9 = pneg %p970_p7 }
  0xde   : > { %p976_p13 = pnand %p975_p12, %p971_p9 }
  0xe0   : > { %979 = shalt.err (!%p976_p13)
}
  0xe1   : > { %822 = dma.vmem_to_hbm [thread:$0]  (%p1098_p4), %s677_s29, 32, %s674_s28, %s657_s30   ;;  %v495_v20 = vld [vmem:[#allocation2] sm:$0xff]  ;;  %v497_v21 = vld [vmem:[#allocation2 + $0x10] sm:$0xff]  ;;  %v496_v28 = vld [vmem:[#allocation2 + $0x8] sm:$0xff] }
  0xe2   : > { %v498_v45 = vld [vmem:[#allocation2 + $0x18] sm:$0xff]  ;;  %s793_s21 = sshll.u32 %s1131_s7, 5 }
  0xe3   : > { %s211_s26 = scalar_lea.vmem %s1261_s2, %s793_s21 }
 0x175   : > { %v565_v19 = vpop.f32.mrf.mxu0 }
 0x176   : > { %v584_v22 = vadd.f32 %v565_v19, %v495_v20  ;;  %v575_v23 = vpop.f32.mrf.mxu1 }
 0x177   : > { %v586_v25 = vadd.f32 %v575_v23, %v497_v21  ;;  %v567_v26 = vpop.f32.mrf.mxu0 }
 0x178   : > { %589 = vst.msk [vmem:[#allocation2] sm:$0xff] %vm217_vm0, %v584_v22  ;;  %v577_v27 = vpop.f32.mrf.mxu1 }
 0x179   : > { %591 = vst.msk [vmem:[#allocation2 + $0x10] sm:$0xff] %vm217_vm0, %v586_v25 }
 0x17c   : > { %v570_v24 = vpop.f32.mrf.mxu0  ;;  %v580_v29 = vpop.f32.mrf.mxu1 }
 0x17d   : > { %v585_v30 = vadd.f32 %v570_v24, %v496_v28  ;;  %v587_v46 = vadd.f32 %v580_v29, %v498_v45 }
 0x17e   : > { %v572_v31 = vpop.f32.mrf.mxu0  ;;  %v582_v32 = vpop.f32.mrf.mxu1 }
 0x17f   : > { %590 = vst.msk [vmem:[#allocation2 + $0x8] sm:$0xff] %vm217_vm0, %v585_v30  ;;  %592 = vst.msk [vmem:[#allocation2 + $0x18] sm:$0xff] %vm217_vm0, %v587_v46  ;;  %v639_v33 = vld [vmem:[#allocation2] sm:$0xff] }
 0x180   : > { %v643_v34 = vmul.f32 0.00390625, %v639_v33  ;;  %v641_v35 = vld [vmem:[#allocation2 + $0x10] sm:$0xff] }
 0x181   : > { %v645_v36 = vmul.f32 0.00390625, %v641_v35 }
 0x182   : > { %647 = vst.msk [vmem:[%s211_s26] sm:$0xff] %vm217_vm0, %v643_v34 }
 0x183   : > { %649 = vst.msk [vmem:[%s211_s26 + $0x10] sm:$0xff] %vm217_vm0, %v645_v36 }
 0x186   : > { %v640_v37 = vld [vmem:[#allocation2 + $0x8] sm:$0xff]  ;;  %v642_v38 = vld [vmem:[#allocation2 + $0x18] sm:$0xff] }
 0x187   : > { %v644_v39 = vmul.f32 0.00390625, %v640_v37  ;;  %v646_v42 = vmul.f32 0.00390625, %v642_v38 }
 0x189   : > { %648 = vst.msk [vmem:[%s211_s26 + $0x8] sm:$0xff] %vm217_vm0, %v644_v39  ;;  %650 = vst.msk [vmem:[%s211_s26 + $0x18] sm:$0xff] %vm217_vm0, %v646_v42 }
 0x18a PF: > { %p828_p4 = scmp.ge.s32.totalorder %s1030_s17, 2  ;;  %s696_s7 = sand.u32 1, %s1010_s12  }
 0x18b   : > { %s697_s27 = scalar_lea.sflag [#allocation4], %s696_s7 }
 0x18c   : > { %p825_p0 = pnand %p828_p4, %p1105_p8 }
 0x18e   : > { %p826_p1 = pneg %p825_p0 }
 0x190   : > { %1005 = dma.done.wait (%p826_p1), %s697_s27, 32  }
 0x191   : > { %1007 = vsyncadd (%p826_p1), %s697_s27, 4294967264  ;;  %s17_s17 = sadd.s32 1, %s1030_s17   ;;  %s1265_s12 = smov %s1014_s13 }
 0x192   : > { %p14_p2 = scmp.ge.s32.totalorder %s17_s17, 14   ;;  %s1266_s13 = smov %s1018_s14 }
 0x193   : > { %s1267_s14 = smov %s1111_s25  ;;  %s1268_s15 = smov %s1026_s16 }
 0x194   : > { %s1269_s16 = smov %s1271_s20  ;;  %16 = sbr.rel (!%p14_p2) target bundleno = 4 (0x4), region = 83 }
 0x199   :  { %702 = vsyncpa [#allocation4], 1 }
 0x19a   :  { %704 = vsyncpa [#allocation4 + $0x1], 1 }

// kernel: ensemble_forward.4
= control target key start
LH: loop header
LB: loop body
LE: loop exit
PB: predicated region body
PF: predicated region fallthrough
CT: control target
= control target key end

     0   :  { %s538_s15 = smov 0   ;;  %s583_s0 = inlined_call_operand.vmem [shape: bf16[2,16,48], index: 0, kind: input, shape index: {}]   ;;  %s584_s1 = inlined_call_operand.vmem [shape: bf16[48,32], index: 1, kind: input, shape index: {}]   ;;  %s585_s2 = inlined_call_operand.vmem [shape: bf16[32,256], index: 2, kind: input, shape index: {}]   ;;  %s586_s3 = inlined_call_operand.vmem [shape: f32[1,256], index: 3, kind: input, shape index: {}]   ;;  %s587_s4 = inlined_call_operand.vmem [shape: f32[2,1,256], index: 4, kind: output, shape index: {}]  }
   0x1 LB: > { %s444_s16 = sadd.s32 4294967295, %s507_s15   ;;  %p448_p0 = scmp.ge.s32.totalorder %s507_s15, 1  ;;  %s507_s15 = sphi %s538_s15, %s14_s15  }
   0x2   : > { %p162_p1 = scmp.lt.s32.totalorder %s507_s15, 3 }
   0x4   : > { %p163_p2 = pnand %p448_p0, %p162_p1 }
   0x5   : > { %p187_p3 = scmp.lt.s32.totalorder (!%p163_p2), %s444_s16, 1 }
   0x6   : > { %166 = sbr.rel (%p163_p2) target bundleno = 446 (0x1be), region = 36 }
   0xb   : > { %v491_v0 = vld [vmem:[%s584_s1 + $0x10] sm:$0xff]   ;;  %v509_v1 = vmov 0.0   ;;  %v492_v2 = vld [vmem:[%s584_s1 + $0x8] sm:$0xff]   ;;  %vm510_vm0 = vmmov 0   ;;  %s589_s16 = smov (!%p187_p3, %s444_s16), 1  ;;  %v493_v3 = vld [vmem:[%s584_s1] sm:$0xff]   ;;  %v314_v27 = vlaneseq }
   0xc   : > { %469 = vmatprep.subr.bf16.mxu0 %v509_v1  ;;  %475 = vmatprep.mubr.msk.bf16.mxu0 %vm510_vm0, %v509_v1  ;;  %s464_s23 = sshll.u32 %s589_s16, 3  ;;  %vm228_vm1 = vcmask 392192   ;;  %v495_v5 = vld [vmem:[%s585_s2 + $0x14] ss:$8 sps:$4 sm:$0xff]   ;;  %v497_v6 = vld [vmem:[%s585_s2 + $0x10] ss:$8 sps:$4 sm:$0xff]  }
   0xd   : > { %470 = vmatpush3.bf16.msra.mxu0 %v491_v0  ;;  %s191_s26 = scalar_lea.vmem %s583_s0, %s464_s23  ;;  %339 = vmatprep.subr.bf16.mxu1 %v495_v5  ;;  %v498_v7 = vld [vmem:[%s585_s2 + $0x4] ss:$8 sps:$4 sm:$0xff]   ;;  %v500_v8 = vld [vmem:[%s585_s2] ss:$8 sps:$4 sm:$0xff]   ;;  %v511_v9 = vmov 0   ;;  %vm275_vm2 = vcmask 261120  }
   0xe   : > { %471 = vmatprep.subr.bf16.mxu0 %v509_v1  ;;  %v494_v4 = vld [vmem:[%s191_s26] sm:$0xff]   ;;  %340 = vmatpush1.bf16.msra.mxu1 %v497_v6  ;;  %v315_v28 = vshrl.u32 %v314_v27, 7  ;;  %v512_v31 = vmov 1966171168   ;;  %s451_s11 = sshll.u32 %s589_s16, 1  ;;  %vm388_vm3 = vcmp.lt.s32.totalorder %v314_v27, 256 }
   0xf   : > { %359 = vmatprep.mubr.bf16.mxu1 %v511_v9  ;;  %341 = vmatprep.subr.bf16.mxu1 %v498_v7  ;;  %v372_v32 = vunpack.c.l.s4 %v512_v31  ;;  %v292_v33 = vld [vmem:[%s586_s3] sm:$0x3]  ;;  %s195_s14 = scalar_lea.vmem %s587_s4, %s451_s11 }
  0x10   : > { %v316_v29 = vsub.s32 0, %v315_v28  ;;  %v320_v30 = vsub.s32 1, %v315_v28 }
  0x11   : > { %472 = vmatpush3.bf16.msra.mxu0 %v492_v2  ;;  %v373_v36 = vunpack.c.0.s8 %v372_v32 }
  0x12   : > { %473 = vmatprep.subr.bf16.mxu0 %v509_v1  ;;  %342 = vmatpush1.bf16.msra.mxu1 %v500_v8  ;;  %v317_v34 = vrot.slane %v292_v33, %v316_v29  ;;  %v321_v35 = vrot.slane %v292_v33, %v320_v30 }
  0x13   : > { %v376_v41 = vsub.s32 %v373_v36, %v315_v28 }
  0x15   : > { %474 = vmatpush3.bf16.msra.mxu0 %v493_v3 }
  0x18   : > { %476 = vmatmul.mubr.msk.bf16.vlgmr.msra.gmra.mxu0 %vm228_vm1, %v494_v4 }
  0xd8   : > { %v266_v10 = vpop.f32.mrf.mxu0 }
  0xd9   : > { %v273_v12 = vmax.f32 %v266_v10, 0.0 }
  0xda   : > { %v477_v11 = vpop.f32.mrf.mxu0 }
  0xdb   : > { %v276_v16 = vsel %vm275_vm2, %v273_v12, 0.0 }
  0xdc   : > { %v269_v13 = vpop.f32.mrf.mxu0 }
  0xdd   : > { %v274_v14 = vmax.f32 %v269_v13, 0.0 }
  0xde   : > { %v478_v15 = vpop.f32.mrf.mxu0 }
  0xdf   : > { %v277_v17 = vsel %vm275_vm2, %v274_v14, 0.0 }
  0xe0   : > { %v278_v18 = vadd.f32 %v277_v17, %v276_v16 }
  0xe2   : > { %v279_v19 = vrot.slane %v278_v18, 4 }
  0xe4   : > { %v280_v20 = vadd.f32 %v279_v19, %v278_v18 }
  0xe6   : > { %v281_v21 = vrot.slane %v280_v20, 2 }
  0xe8   : > { %v282_v22 = vadd.f32 %v281_v21, %v280_v20 }
  0xea   : > { %v283_v23 = vrot.slane %v282_v22, 1 }
  0xec   : > { %v284_v24 = vadd.f32 %v283_v23, %v282_v22 }
  0xee   : > { %v286_v25 = vmul.f32 0.0625, %v284_v24 }
  0xf0   : > { %v287_v26 = vpack.c.bf16 %v286_v25, %v286_v25 }
  0xf2   : > { %461 = vmatmul.mubr.msk.bf16.vlgmr.msra.gmra.mxu1 %vm275_vm2, %v287_v26 }
 0x1b2   : > { %v361_v37 = vpop.f32.mrf.mxu1 }
 0x1b3   : > { %v362_v39 = vadd.f32 %v361_v37, %v317_v34 }
 0x1b4   : > { %v363_v38 = vpop.f32.mrf.mxu1 }
 0x1b5   : > { %v364_v40 = vadd.f32 %v363_v38, %v321_v35 }
 0x1b6   : > { %v365_v42 = vpop.f32.mrf.mxu1 }
 0x1b7   : > { %v370_v43 = vcombine.low %v362_v39, %v364_v40 }
 0x1b8   : > { %v366_v44 = vpop.f32.mrf.mxu1 }
 0x1b9   : > { %v377_v45 = vrot.slane %v370_v43, %v376_v41 }
 0x1bb   : > { %v384_v46 = vrot.slane %v377_v45, %v376_v41 }
 0x1bd   : > { %390 = vst.msk [vmem:[%s195_s14] sm:$0x3] %vm388_vm3, %v384_v46 }
 0x1be PF: > { %s14_s15 = sadd.s32 1, %s507_s15  }
 0x1bf   : > { %p11_p4 = scmp.ge.s32.totalorder %s14_s15, 4  }
 0x1c1   :  { %13 = sbr.rel (!%p11_p4) target bundleno = 1 (0x1), region = 66 }

// kernel: ensemble_forward.7
= control target key start
LH: loop header
LB: loop body
LE: loop exit
PB: predicated region body
PF: predicated region fallthrough
CT: control target
= control target key end

     0   :  { %v1513_v62 = vmov 1983009808   ;;  %s2002_s0 = inlined_call_operand.vmem [shape: f32[8,2,1024], index: 0, kind: input, shape index: {}]   ;;  %s2003_s1 = inlined_call_operand.vmem [shape: bf16[1024,256], index: 1, kind: input, shape index: {}]   ;;  %s2004_s2 = inlined_call_operand.vmem [shape: f32[1,256], index: 2, kind: input, shape index: {}]   ;;  %s2005_s3 = inlined_call_operand.vmem [shape: f32[2,256], index: 3, kind: input, shape index: {}]   ;;  %s2006_s4 = inlined_call_operand.hbm [shape: f32[2,256], index: 4, kind: output, shape index: {}]  }
   0x1   :  { %v1287_v0 = vld [vmem:[%s2003_s1 + $0x74] ss:$8 sps:$4 sm:$0xff]   ;;  %v1291_v2 = vld [vmem:[%s2003_s1 + $0x70] ss:$8 sps:$4 sm:$0xff]   ;;  %v1293_v4 = vld [vmem:[%s2003_s1 + $0x64] ss:$8 sps:$4 sm:$0xff]   ;;  %v61_v63 = vunpack.c.l.s4 %v1513_v62 }
   0x2   :  { %v1289_v1 = vld [vmem:[%s2003_s1 + $0x174] ss:$8 sps:$4 sm:$0xff]   ;;  %889 = vmatprep.subr.bf16.mxu0 %v1287_v0  ;;  %v1292_v3 = vld [vmem:[%s2003_s1 + $0x170] ss:$8 sps:$4 sm:$0xff]   ;;  %v1295_v5 = vld [vmem:[%s2003_s1 + $0x164] ss:$8 sps:$4 sm:$0xff]   ;;  %v63_v0 = vlaneseq }
   0x3   :  { %930 = vmatprep.subr.bf16.mxu1 %v1289_v1  ;;  %890 = vmatpush1.bf16.msra.mxu0 %v1291_v2  ;;  %v1297_v6 = vld [vmem:[%s2003_s1 + $0x60] ss:$8 sps:$4 sm:$0xff]   ;;  %v1299_v8 = vld [vmem:[%s2003_s1 + $0x54] ss:$8 sps:$4 sm:$0xff]   ;;  %v1303_v10 = vld [vmem:[%s2003_s1 + $0x50] ss:$8 sps:$4 sm:$0xff]  }
   0x4   :  { %931 = vmatpush1.bf16.msra.mxu1 %v1292_v3  ;;  %891 = vmatprep.subr.bf16.mxu0 %v1293_v4  ;;  %v1298_v7 = vld [vmem:[%s2003_s1 + $0x160] ss:$8 sps:$4 sm:$0xff]   ;;  %v1301_v9 = vld [vmem:[%s2003_s1 + $0x154] ss:$8 sps:$4 sm:$0xff]   ;;  %v1304_v11 = vld [vmem:[%s2003_s1 + $0x150] ss:$8 sps:$4 sm:$0xff]  }
   0x5   :  { %932 = vmatprep.subr.bf16.mxu1 %v1295_v5  ;;  %v1305_v12 = vld [vmem:[%s2003_s1 + $0x44] ss:$8 sps:$4 sm:$0xff]   ;;  %v1309_v14 = vld [vmem:[%s2003_s1 + $0x40] ss:$8 sps:$4 sm:$0xff]   ;;  %v1311_v16 = vld [vmem:[%s2003_s1 + $0x34] ss:$8 sps:$4 sm:$0xff]  }
   0x6   :  { %v1307_v13 = vld [vmem:[%s2003_s1 + $0x144] ss:$8 sps:$4 sm:$0xff]   ;;  %v1310_v15 = vld [vmem:[%s2003_s1 + $0x140] ss:$8 sps:$4 sm:$0xff]   ;;  %v1313_v17 = vld [vmem:[%s2003_s1 + $0x134] ss:$8 sps:$4 sm:$0xff]  }
   0x7   :  { %892 = vmatpush1.bf16.msra.mxu0 %v1297_v6  ;;  %v1315_v18 = vld [vmem:[%s2003_s1 + $0x30] ss:$8 sps:$4 sm:$0xff]   ;;  %v1317_v20 = vld [vmem:[%s2003_s1 + $0x24] ss:$8 sps:$4 sm:$0xff]   ;;  %v1321_v22 = vld [vmem:[%s2003_s1 + $0x20] ss:$8 sps:$4 sm:$0xff]  }
   0x8   :  { %933 = vmatpush1.bf16.msra.mxu1 %v1298_v7  ;;  %893 = vmatprep.subr.bf16.mxu0 %v1299_v8  ;;  %v1316_v19 = vld [vmem:[%s2003_s1 + $0x130] ss:$8 sps:$4 sm:$0xff]   ;;  %v1319_v21 = vld [vmem:[%s2003_s1 + $0x124] ss:$8 sps:$4 sm:$0xff]   ;;  %v1322_v23 = vld [vmem:[%s2003_s1 + $0x120] ss:$8 sps:$4 sm:$0xff]  }
   0x9   :  { %934 = vmatprep.subr.bf16.mxu1 %v1301_v9  ;;  %v1323_v24 = vld [vmem:[%s2003_s1 + $0x14] ss:$8 sps:$4 sm:$0xff]   ;;  %v1327_v26 = vld [vmem:[%s2003_s1 + $0x10] ss:$8 sps:$4 sm:$0xff]   ;;  %v1329_v28 = vld [vmem:[%s2003_s1 + $0x4] ss:$8 sps:$4 sm:$0xff]   ;;  %v62_v9 = vunpack.c.0.s8 %v61_v63 }
   0xa   :  { %v1325_v25 = vld [vmem:[%s2003_s1 + $0x114] ss:$8 sps:$4 sm:$0xff]   ;;  %v1328_v27 = vld [vmem:[%s2003_s1 + $0x110] ss:$8 sps:$4 sm:$0xff]   ;;  %v1331_v29 = vld [vmem:[%s2003_s1 + $0x104] ss:$8 sps:$4 sm:$0xff]  }
   0xb   :  { %894 = vmatpush1.bf16.msra.mxu0 %v1303_v10  ;;  %v1333_v30 = vld [vmem:[%s2003_s1] ss:$8 sps:$4 sm:$0xff]   ;;  %v1335_v32 = vld [vmem:[%s2003_s1 + $0xf4] ss:$8 sps:$4 sm:$0xff]   ;;  %v1339_v34 = vld [vmem:[%s2003_s1 + $0xf0] ss:$8 sps:$4 sm:$0xff]  }
   0xc   :  { %935 = vmatpush1.bf16.msra.mxu1 %v1304_v11  ;;  %895 = vmatprep.subr.bf16.mxu0 %v1305_v12  ;;  %v1334_v31 = vld [vmem:[%s2003_s1 + $0x100] ss:$8 sps:$4 sm:$0xff]   ;;  %v1337_v33 = vld [vmem:[%s2003_s1 + $0x1f4] ss:$8 sps:$4 sm:$0xff]   ;;  %v1340_v35 = vld [vmem:[%s2003_s1 + $0x1f0] ss:$8 sps:$4 sm:$0xff]  }
   0xd   :  { %936 = vmatprep.subr.bf16.mxu1 %v1307_v13  ;;  %v1341_v36 = vld [vmem:[%s2003_s1 + $0xe4] ss:$8 sps:$4 sm:$0xff]   ;;  %v1345_v38 = vld [vmem:[%s2003_s1 + $0xe0] ss:$8 sps:$4 sm:$0xff]   ;;  %v1347_v40 = vld [vmem:[%s2003_s1 + $0xd4] ss:$8 sps:$4 sm:$0xff]  }
   0xe   :  { %v1343_v37 = vld [vmem:[%s2003_s1 + $0x1e4] ss:$8 sps:$4 sm:$0xff]   ;;  %v1346_v39 = vld [vmem:[%s2003_s1 + $0x1e0] ss:$8 sps:$4 sm:$0xff]   ;;  %v1349_v41 = vld [vmem:[%s2003_s1 + $0x1d4] ss:$8 sps:$4 sm:$0xff]  }
   0xf   :  { %896 = vmatpush1.bf16.msra.mxu0 %v1309_v14  ;;  %v1351_v42 = vld [vmem:[%s2003_s1 + $0xd0] ss:$8 sps:$4 sm:$0xff]   ;;  %v1353_v44 = vld [vmem:[%s2003_s1 + $0xc4] ss:$8 sps:$4 sm:$0xff]   ;;  %v1357_v47 = vld [vmem:[%s2003_s1 + $0xc0] ss:$8 sps:$4 sm:$0xff]  }
  0x10   :  { %937 = vmatpush1.bf16.msra.mxu1 %v1310_v15  ;;  %897 = vmatprep.subr.bf16.mxu0 %v1311_v16  ;;  %v1352_v43 = vld [vmem:[%s2003_s1 + $0x1d0] ss:$8 sps:$4 sm:$0xff]   ;;  %v1355_v45 = vld [vmem:[%s2003_s1 + $0x1c4] ss:$8 sps:$4 sm:$0xff]   ;;  %v1358_v50 = vld [vmem:[%s2003_s1 + $0x1c0] ss:$8 sps:$4 sm:$0xff]  }
  0x11   :  { %938 = vmatprep.subr.bf16.mxu1 %v1313_v17  ;;  %v18_v46 = vld [vmem:[%s2002_s0] sm:$0xff]  ;;  %v1141_v48 = vld [vmem:[%s2002_s0 + $0x10] sm:$0xff]  ;;  %v1736_v10 = vshrl.u32 %v63_v0, 7 }
  0x12   :  { %v1143_v49 = vld [vmem:[%s2002_s0 + $0x20] sm:$0xff]  ;;  %v1359_v51 = vld [vmem:[%s2003_s1 + $0xb4] ss:$8 sps:$4 sm:$0xff]   ;;  %v23_v53 = vadd.f32 %v1141_v48, %v18_v46  ;;  %v1363_v55 = vld [vmem:[%s2003_s1 + $0xb0] ss:$8 sps:$4 sm:$0xff]  }
  0x13   :  { %898 = vmatpush1.bf16.msra.mxu0 %v1315_v18  ;;  %v1361_v52 = vld [vmem:[%s2003_s1 + $0x1b4] ss:$8 sps:$4 sm:$0xff]   ;;  %v1364_v56 = vld [vmem:[%s2003_s1 + $0x1b0] ss:$8 sps:$4 sm:$0xff]   ;;  %v1365_v58 = vld [vmem:[%s2003_s1 + $0xa4] ss:$8 sps:$4 sm:$0xff]   ;;  %v1751_v17 = vsub.s32 %v62_v9, %v1736_v10 }
  0x14   :  { %939 = vmatpush1.bf16.msra.mxu1 %v1316_v19  ;;  %899 = vmatprep.subr.bf16.mxu0 %v1317_v20  ;;  %v1145_v54 = vld [vmem:[%s2002_s0 + $0x30] sm:$0xff]  ;;  %v28_v57 = vadd.f32 %v1143_v49, %v23_v53  ;;  %v1147_v59 = vld [vmem:[%s2002_s0 + $0x40] sm:$0xff] }
  0x15   :  { %940 = vmatprep.subr.bf16.mxu1 %v1319_v21  ;;  %v1367_v60 = vld [vmem:[%s2003_s1 + $0x1a4] ss:$8 sps:$4 sm:$0xff]   ;;  %v1149_v1 = vld [vmem:[%s2002_s0 + $0x50] sm:$0xff]  ;;  %v1369_v2 = vld [vmem:[%s2003_s1 + $0xa0] ss:$8 sps:$4 sm:$0xff]  }
  0x16   :  { %v33_v61 = vadd.f32 %v1145_v54, %v28_v57  ;;  %v1370_v3 = vld [vmem:[%s2003_s1 + $0x1a0] ss:$8 sps:$4 sm:$0xff]   ;;  %v1371_v5 = vld [vmem:[%s2003_s1 + $0x94] ss:$8 sps:$4 sm:$0xff]   ;;  %v1375_v13 = vld [vmem:[%s2003_s1 + $0x90] ss:$8 sps:$4 sm:$0xff]  }
  0x17   :  { %900 = vmatpush1.bf16.msra.mxu0 %v1321_v22  ;;  %v1151_v6 = vld [vmem:[%s2002_s0 + $0x60] sm:$0xff]  ;;  %v1373_v7 = vld [vmem:[%s2003_s1 + $0x194] ss:$8 sps:$4 sm:$0xff]   ;;  %v1376_v14 = vld [vmem:[%s2003_s1 + $0x190] ss:$8 sps:$4 sm:$0xff]  }
  0x18   :  { %941 = vmatpush1.bf16.msra.mxu1 %v1322_v23  ;;  %901 = vmatprep.subr.bf16.mxu0 %v1323_v24  ;;  %v38_v4 = vadd.f32 %v1147_v59, %v33_v61  ;;  %v1153_v11 = vld [vmem:[%s2002_s0 + $0x70] sm:$0xff]  ;;  %v1377_v15 = vld [vmem:[%s2003_s1 + $0x84] ss:$8 sps:$4 sm:$0xff]   ;;  %v1381_v20 = vld [vmem:[%s2003_s1 + $0x80] ss:$8 sps:$4 sm:$0xff]  }
  0x19   :  { %942 = vmatprep.subr.bf16.mxu1 %v1325_v25  ;;  %v1379_v18 = vld [vmem:[%s2003_s1 + $0x184] ss:$8 sps:$4 sm:$0xff]   ;;  %v1382_v21 = vld [vmem:[%s2003_s1 + $0x180] ss:$8 sps:$4 sm:$0xff]   ;;  %v1385_v24 = vld [vmem:[%s2003_s1 + $0x274] ss:$8 sps:$4 sm:$0xff]  }
  0x1a   :  { %v43_v8 = vadd.f32 %v1149_v1, %v38_v4  ;;  %v1388_v25 = vld [vmem:[%s2003_s1 + $0x374] ss:$8 sps:$4 sm:$0xff]   ;;  %v1407_v49 = vld [vmem:[%s2003_s1 + $0x230] ss:$8 sps:$4 sm:$0xff]   ;;  %v1413_v53 = vld [vmem:[%s2003_s1 + $0x220] ss:$8 sps:$4 sm:$0xff]  }
  0x1b   :  { %902 = vmatpush1.bf16.msra.mxu0 %v1327_v26  ;;  %v1409_v46 = vld [vmem:[%s2003_s1 + $0x234] ss:$8 sps:$4 sm:$0xff]   ;;  %v1427_v61 = vld [vmem:[%s2003_s1 + $0x204] ss:$8 sps:$4 sm:$0xff]   ;;  %v1422_v63 = vld [vmem:[%s2003_s1 + $0x310] ss:$8 sps:$4 sm:$0xff]  }
  0x1c   :  { %943 = vmatpush1.bf16.msra.mxu1 %v1328_v27  ;;  %903 = vmatprep.subr.bf16.mxu0 %v1329_v28  ;;  %v48_v12 = vadd.f32 %v1151_v6, %v43_v8  ;;  %v1412_v48 = vld [vmem:[%s2003_s1 + $0x334] ss:$8 sps:$4 sm:$0xff]  }
  0x1d   :  { %944 = vmatprep.subr.bf16.mxu1 %v1331_v29  ;;  %v1421_v54 = vld [vmem:[%s2003_s1 + $0x214] ss:$8 sps:$4 sm:$0xff]  }
  0x1e   :  { %v53_v16 = vadd.f32 %v1153_v11, %v48_v12  ;;  %v1424_v57 = vld [vmem:[%s2003_s1 + $0x314] ss:$8 sps:$4 sm:$0xff]  }
  0x1f   :  { %904 = vmatpush1.bf16.msra.mxu0 %v1333_v30  ;;  %v1142_v59 = vld [vmem:[%s2002_s0 + $0x18] sm:$0xff] }
  0x20   :  { %945 = vmatpush1.bf16.msra.mxu1 %v1334_v31  ;;  %905 = vmatprep.subr.bf16.mxu0 %v1335_v32  ;;  %v55_v19 = vmul.f32 0.125, %v53_v16  ;;  %v1383_v31 = vld [vmem:[%s2003_s1 + $0x270] ss:$8 sps:$4 sm:$0xff]  }
  0x21   :  { %946 = vmatprep.subr.bf16.mxu1 %v1337_v33  ;;  %v1391_v33 = vld [vmem:[%s2003_s1 + $0x264] ss:$8 sps:$4 sm:$0xff]   ;;  %v1146_v1 = vld [vmem:[%s2002_s0 + $0x38] sm:$0xff] }
  0x22   :  { %v66_v22 = vrot.slane %v55_v19, %v1751_v17  ;;  %v59_v23 = vcombine.high %v55_v19, %v55_v19 }
  0x23   :  { %906 = vmatpush2.bf16.msra.mxu0 %v1339_v34 }
  0x24   :  { %947 = vmatpush2.bf16.msra.mxu1 %v1340_v35  ;;  %907 = vmatprep.subr.bf16.mxu0 %v1341_v36  ;;  %v74_v26 = vcombine.high %v66_v22, %v66_v22  ;;  %v73_v27 = vrot.slane %v59_v23, %v1751_v17  ;;  %v101_v28 = vpack.c.bf16 %v66_v22, %v66_v22  ;;  %v1386_v35 = vld [vmem:[%s2003_s1 + $0x370] ss:$8 sps:$4 sm:$0xff]   ;;  %v1394_v36 = vld [vmem:[%s2003_s1 + $0x364] ss:$8 sps:$4 sm:$0xff]  }
  0x25   :  { %948 = vmatprep.subr.bf16.mxu1 %v1343_v37  ;;  %v1389_v37 = vld [vmem:[%s2003_s1 + $0x260] ss:$8 sps:$4 sm:$0xff]  }
  0x26   :  { %v102_v29 = vpack.c.bf16 %v74_v26, %v74_v26  ;;  %v75_v30 = vcombine.high %v73_v27, %v73_v27  ;;  %v103_v32 = vpack.c.bf16 %v73_v27, %v73_v27 }
  0x27   :  { %908 = vmatpush2.bf16.msra.mxu0 %v1345_v38  ;;  %v1397_v38 = vld [vmem:[%s2003_s1 + $0x254] ss:$8 sps:$4 sm:$0xff]  }
  0x28   :  { %949 = vmatpush2.bf16.msra.mxu1 %v1346_v39  ;;  %909 = vmatprep.subr.bf16.mxu0 %v1347_v40  ;;  %v104_v34 = vpack.c.bf16 %v75_v30, %v75_v30  ;;  %v1392_v39 = vld [vmem:[%s2003_s1 + $0x360] ss:$8 sps:$4 sm:$0xff]   ;;  %v1400_v40 = vld [vmem:[%s2003_s1 + $0x354] ss:$8 sps:$4 sm:$0xff]  }
  0x29   :  { %950 = vmatprep.subr.bf16.mxu1 %v1349_v41  ;;  %921 = vmatprep.mubr.bf16.mxu0 %v102_v29  ;;  %v1395_v41 = vld [vmem:[%s2003_s1 + $0x250] ss:$8 sps:$4 sm:$0xff]  }
  0x2a   :  { %962 = vmatprep.mubr.bf16.mxu1 %v104_v34 }
  0x2b   :  { %910 = vmatpush2.bf16.msra.mxu0 %v1351_v42  ;;  %v1403_v42 = vld [vmem:[%s2003_s1 + $0x244] ss:$8 sps:$4 sm:$0xff]  }
  0x2c   :  { %951 = vmatpush2.bf16.msra.mxu1 %v1352_v43  ;;  %911 = vmatprep.subr.bf16.mxu0 %v1353_v44  ;;  %v1398_v43 = vld [vmem:[%s2003_s1 + $0x350] ss:$8 sps:$4 sm:$0xff]   ;;  %v1406_v44 = vld [vmem:[%s2003_s1 + $0x344] ss:$8 sps:$4 sm:$0xff]  }
  0x2d   :  { %952 = vmatprep.subr.bf16.mxu1 %v1355_v45  ;;  %v1401_v45 = vld [vmem:[%s2003_s1 + $0x240] ss:$8 sps:$4 sm:$0xff]  }
  0x2f   :  { %912 = vmatpush2.bf16.msra.mxu0 %v1357_v47  ;;  %v1404_v47 = vld [vmem:[%s2003_s1 + $0x340] ss:$8 sps:$4 sm:$0xff]  }
  0x30   :  { %953 = vmatpush2.bf16.msra.mxu1 %v1358_v50  ;;  %913 = vmatprep.subr.bf16.mxu0 %v1359_v51  ;;  %v1415_v50 = vld [vmem:[%s2003_s1 + $0x224] ss:$8 sps:$4 sm:$0xff]   ;;  %v1410_v51 = vld [vmem:[%s2003_s1 + $0x330] ss:$8 sps:$4 sm:$0xff]  }
  0x31   :  { %954 = vmatprep.subr.bf16.mxu1 %v1361_v52  ;;  %v1418_v52 = vld [vmem:[%s2003_s1 + $0x324] ss:$8 sps:$4 sm:$0xff]  }
  0x33   :  { %914 = vmatpush2.bf16.msra.mxu0 %v1363_v55  ;;  %v1416_v55 = vld [vmem:[%s2003_s1 + $0x320] ss:$8 sps:$4 sm:$0xff]  }
  0x34   :  { %955 = vmatpush2.bf16.msra.mxu1 %v1364_v56  ;;  %915 = vmatprep.subr.bf16.mxu0 %v1365_v58  ;;  %v1419_v56 = vld [vmem:[%s2003_s1 + $0x210] ss:$8 sps:$4 sm:$0xff]   ;;  %v19_v58 = vld [vmem:[%s2002_s0 + $0x8] sm:$0xff] }
  0x35   :  { %956 = vmatprep.subr.bf16.mxu1 %v1367_v60  ;;  %v1144_v60 = vld [vmem:[%s2002_s0 + $0x28] sm:$0xff]  ;;  %v24_v62 = vadd.f32 %v1142_v59, %v19_v58 }
  0x37   :  { %916 = vmatpush2.bf16.msra.mxu0 %v1369_v2  ;;  %v1430_v2 = vld [vmem:[%s2003_s1 + $0x304] ss:$8 sps:$4 sm:$0xff]  }
  0x38   :  { %957 = vmatpush2.bf16.msra.mxu1 %v1370_v3  ;;  %917 = vmatprep.subr.bf16.mxu0 %v1371_v5  ;;  %v29_v3 = vadd.f32 %v1144_v60, %v24_v62 }
  0x39   :  { %958 = vmatprep.subr.bf16.mxu1 %v1373_v7 }
  0x3b   :  { %918 = vmatpush2.bf16.msra.mxu0 %v1375_v13 }
  0x3c   :  { %959 = vmatpush2.bf16.msra.mxu1 %v1376_v14  ;;  %919 = vmatprep.subr.bf16.mxu0 %v1377_v15 }
  0x3d   :  { %960 = vmatprep.subr.bf16.mxu1 %v1379_v18 }
  0x3f   :  { %920 = vmatpush2.bf16.msra.mxu0 %v1381_v20 }
  0x40   :  { %961 = vmatpush2.bf16.msra.mxu1 %v1382_v21  ;;  %971 = vmatprep.subr.bf16.mxu0 %v1385_v24 }
  0x41   :  { %1012 = vmatprep.subr.bf16.mxu1 %v1388_v25 }
  0x42   :  { %922 = vmatmul.mubr.bf16.vlgmr.msra.gmra.mxu0 %v101_v28 }
  0x43   :  { %972 = vmatpush1.bf16.msra.mxu0 %v1383_v31  ;;  %963 = vmatmul.mubr.bf16.vlgmr.msra.gmra.mxu1 %v103_v32 }
  0x44   :  { %973 = vmatprep.subr.bf16.mxu0 %v1391_v33  ;;  %1013 = vmatpush1.bf16.msra.mxu1 %v1386_v35 }
  0x45   :  { %1014 = vmatprep.subr.bf16.mxu1 %v1394_v36 }
  0x47   :  { %974 = vmatpush1.bf16.msra.mxu0 %v1389_v37 }
  0x48   :  { %975 = vmatprep.subr.bf16.mxu0 %v1397_v38  ;;  %1015 = vmatpush1.bf16.msra.mxu1 %v1392_v39 }
  0x49   :  { %1016 = vmatprep.subr.bf16.mxu1 %v1400_v40 }
  0x4b   :  { %976 = vmatpush1.bf16.msra.mxu0 %v1395_v41 }
  0x4c   :  { %977 = vmatprep.subr.bf16.mxu0 %v1403_v42  ;;  %1017 = vmatpush1.bf16.msra.mxu1 %v1398_v43 }
  0x4d   :  { %1018 = vmatprep.subr.bf16.mxu1 %v1406_v44 }
  0x4f   :  { %978 = vmatpush1.bf16.msra.mxu0 %v1401_v45 }
  0x50   :  { %979 = vmatprep.subr.bf16.mxu0 %v1409_v46  ;;  %1019 = vmatpush1.bf16.msra.mxu1 %v1404_v47 }
  0x51   :  { %1020 = vmatprep.subr.bf16.mxu1 %v1412_v48 }
  0x53   :  { %980 = vmatpush1.bf16.msra.mxu0 %v1407_v49 }
  0x54   :  { %981 = vmatprep.subr.bf16.mxu0 %v1415_v50  ;;  %1021 = vmatpush1.bf16.msra.mxu1 %v1410_v51 }
  0x55   :  { %1022 = vmatprep.subr.bf16.mxu1 %v1418_v52 }
  0x57   :  { %982 = vmatpush1.bf16.msra.mxu0 %v1413_v53 }
  0x58   :  { %983 = vmatprep.subr.bf16.mxu0 %v1421_v54  ;;  %1023 = vmatpush1.bf16.msra.mxu1 %v1416_v55 }
  0x59   :  { %1024 = vmatprep.subr.bf16.mxu1 %v1424_v57 }
  0x5a   :  { %9 = vsyncpa [#allocation3], 0  ;;  %v1425_v4 = vld [vmem:[%s2003_s1 + $0x200] ss:$8 sps:$4 sm:$0xff]   ;;  %v1433_v6 = vld [vmem:[%s2003_s1 + $0x2f4] ss:$8 sps:$4 sm:$0xff]   ;;  %v34_v7 = vadd.f32 %v1146_v1, %v29_v3 }
  0x5b   :  { %984 = vmatpush1.bf16.msra.mxu0 %v1419_v56  ;;  %v1148_v5 = vld [vmem:[%s2002_s0 + $0x48] sm:$0xff]  ;;  %v1150_v9 = vld [vmem:[%s2002_s0 + $0x58] sm:$0xff]  ;;  %v241_v3 = vsub.s32 0, %v1736_v10  ;;  %vm1060_vm1 = vcmask 1041408  }
  0x5c   :  { %985 = vmatprep.subr.bf16.mxu0 %v1427_v61  ;;  %1025 = vmatpush1.bf16.msra.mxu1 %v1422_v63  ;;  %v1428_v8 = vld [vmem:[%s2003_s1 + $0x300] ss:$8 sps:$4 sm:$0xff]   ;;  %v1436_v11 = vld [vmem:[%s2003_s1 + $0x3f4] ss:$8 sps:$4 sm:$0xff]   ;;  %v39_v12 = vadd.f32 %v1148_v5, %v34_v7  ;;  %v1431_v13 = vld [vmem:[%s2003_s1 + $0x2f0] ss:$8 sps:$4 sm:$0xff]  }
  0x5d   :  { %1026 = vmatprep.subr.bf16.mxu1 %v1430_v2  ;;  %v1152_v14 = vld [vmem:[%s2002_s0 + $0x68] sm:$0xff]  ;;  %v1434_v18 = vld [vmem:[%s2003_s1 + $0x3f0] ss:$8 sps:$4 sm:$0xff]   ;;  %v1445_v23 = vld [vmem:[%s2003_s1 + $0x2d4] ss:$8 sps:$4 sm:$0xff]   ;;  %v245_v5 = vsub.s32 1, %v1736_v10 }
  0x5e   :  { %v1439_v15 = vld [vmem:[%s2003_s1 + $0x2e4] ss:$8 sps:$4 sm:$0xff]   ;;  %v44_v16 = vadd.f32 %v1150_v9, %v39_v12  ;;  %v1154_v19 = vld [vmem:[%s2002_s0 + $0x78] sm:$0xff]  ;;  %v1437_v22 = vld [vmem:[%s2003_s1 + $0x2e0] ss:$8 sps:$4 sm:$0xff]   ;;  %v1054_v9 = vand.u32 127, %v63_v0 }
  0x5f   :  { %986 = vmatpush1.bf16.msra.mxu0 %v1425_v4  ;;  %v1442_v20 = vld [vmem:[%s2003_s1 + $0x3e4] ss:$8 sps:$4 sm:$0xff]   ;;  %v1440_v25 = vld [vmem:[%s2003_s1 + $0x3e0] ss:$8 sps:$4 sm:$0xff]   ;;  %v1448_v26 = vld [vmem:[%s2003_s1 + $0x3d4] ss:$8 sps:$4 sm:$0xff]  }
  0x60   :  { %987 = vmatprep.subr.bf16.mxu0 %v1433_v6  ;;  %1027 = vmatpush1.bf16.msra.mxu1 %v1428_v8  ;;  %v49_v21 = vadd.f32 %v1152_v14, %v44_v16  ;;  %v1443_v28 = vld [vmem:[%s2003_s1 + $0x2d0] ss:$8 sps:$4 sm:$0xff]   ;;  %v1451_v29 = vld [vmem:[%s2003_s1 + $0x2c4] ss:$8 sps:$4 sm:$0xff]   ;;  %v1449_v36 = vld [vmem:[%s2003_s1 + $0x2c0] ss:$8 sps:$4 sm:$0xff]  }
  0x61   :  { %1028 = vmatprep.subr.bf16.mxu1 %v1436_v11  ;;  %v1446_v32 = vld [vmem:[%s2003_s1 + $0x3d0] ss:$8 sps:$4 sm:$0xff]   ;;  %v1454_v33 = vld [vmem:[%s2003_s1 + $0x3c4] ss:$8 sps:$4 sm:$0xff]   ;;  %v1457_v37 = vld [vmem:[%s2003_s1 + $0x2b4] ss:$8 sps:$4 sm:$0xff]  }
  0x62   :  { %v54_v24 = vadd.f32 %v1154_v19, %v49_v21  ;;  %v1452_v40 = vld [vmem:[%s2003_s1 + $0x3c0] ss:$8 sps:$4 sm:$0xff]   ;;  %v1455_v42 = vld [vmem:[%s2003_s1 + $0x2b0] ss:$8 sps:$4 sm:$0xff]   ;;  %v1463_v43 = vld [vmem:[%s2003_s1 + $0x2a4] ss:$8 sps:$4 sm:$0xff]  }
  0x63   :  { %988 = vmatpush2.bf16.msra.mxu0 %v1431_v13  ;;  %v1458_v44 = vld [vmem:[%s2003_s1 + $0x3b0] ss:$8 sps:$4 sm:$0xff]   ;;  %v1466_v45 = vld [vmem:[%s2003_s1 + $0x3a4] ss:$8 sps:$4 sm:$0xff]   ;;  %v1461_v46 = vld [vmem:[%s2003_s1 + $0x2a0] ss:$8 sps:$4 sm:$0xff]  }
  0x64   :  { %989 = vmatprep.subr.bf16.mxu0 %v1439_v15  ;;  %1029 = vmatpush2.bf16.msra.mxu1 %v1434_v18  ;;  %v56_v27 = vmul.f32 0.125, %v54_v24  ;;  %v1469_v47 = vld [vmem:[%s2003_s1 + $0x294] ss:$8 sps:$4 sm:$0xff]   ;;  %v1464_v48 = vld [vmem:[%s2003_s1 + $0x3a0] ss:$8 sps:$4 sm:$0xff]   ;;  %v1055_v15 = vadd.s32 128, %v1054_v9 }
  0x65   :  { %1030 = vmatprep.subr.bf16.mxu1 %v1442_v20  ;;  %v1472_v49 = vld [vmem:[%s2003_s1 + $0x394] ss:$8 sps:$4 sm:$0xff]   ;;  %v1467_v50 = vld [vmem:[%s2003_s1 + $0x290] ss:$8 sps:$4 sm:$0xff]   ;;  %v1475_v51 = vld [vmem:[%s2003_s1 + $0x284] ss:$8 sps:$4 sm:$0xff]  }
  0x66   :  { %v83_v30 = vrot.slane %v56_v27, %v1751_v17  ;;  %v76_v31 = vcombine.high %v56_v27, %v56_v27  ;;  %v1470_v52 = vld [vmem:[%s2003_s1 + $0x390] ss:$8 sps:$4 sm:$0xff]   ;;  %v1478_v53 = vld [vmem:[%s2003_s1 + $0x384] ss:$8 sps:$4 sm:$0xff]   ;;  %v1473_v54 = vld [vmem:[%s2003_s1 + $0x280] ss:$8 sps:$4 sm:$0xff]  }
  0x67   :  { %990 = vmatpush2.bf16.msra.mxu0 %v1437_v22  ;;  %v1476_v55 = vld [vmem:[%s2003_s1 + $0x380] ss:$8 sps:$4 sm:$0xff]   ;;  %vm1057_vm0 = vcmp.lt.s32.totalorder %v1055_v15, 200 }
  0x68   :  { %991 = vmatprep.subr.bf16.mxu0 %v1445_v23  ;;  %1031 = vmatpush2.bf16.msra.mxu1 %v1440_v25  ;;  %v91_v34 = vcombine.high %v83_v30, %v83_v30  ;;  %v90_v35 = vrot.slane %v76_v31, %v1751_v17  ;;  %v1460_v17 = vld [vmem:[%s2003_s1 + $0x3b4] ss:$8 sps:$4 sm:$0xff]   ;;  %v105_v56 = vpack.c.bf16 %v83_v30, %v83_v30  ;;  %v237_v4 = vld [vmem:[%s2004_s2] sm:$0x3]  ;;  %s1514_s2 = smov [#allocation2]  }
  0x69   :  { %1032 = vmatprep.subr.bf16.mxu1 %v1448_v26  ;;  %v242_v6 = vrot.slane %v237_v4, %v241_v3  ;;  %v246_v7 = vrot.slane %v237_v4, %v245_v5  ;;  %v1283_v12 = vld.sshfl [vmem:[%s2005_s3] sm:$0x33 pattern:$0x76325410]  ;;  %s1133_s3 = sshll.u32 %s1514_s2, 4  ;;  %s1134_s3 = int_to_ptr.vmem [resolvable:$true] %s1133_s3 }
  0x6a   :  { %v106_v38 = vpack.c.bf16 %v91_v34, %v91_v34  ;;  %v92_v39 = vcombine.high %v90_v35, %v90_v35  ;;  %v107_v57 = vpack.c.bf16 %v90_v35, %v90_v35  ;;  %v1089_v19 = vcombine.high %v1283_v12, %v1283_v12  ;;  %s1491_s18 = scalar_lea.vmem %s1134_s3, 64  ;;  %p1496_p1 = scmp.lt.s32.totalorder %s1134_s3, %s1134_s3 }
  0x6b   :  { %992 = vmatpush2.bf16.msra.mxu0 %v1443_v28  ;;  %p1492_p0 = scmp.ne.s32.totalorder %s1134_s3, %s1491_s18  ;;  %p1497_p2 = scmp.lt.s32.totalorder %s1491_s18, %s1491_s18 }
  0x6c   :  { %993 = vmatprep.subr.bf16.mxu0 %v1451_v29  ;;  %1033 = vmatpush2.bf16.msra.mxu1 %v1446_v32  ;;  %v108_v41 = vpack.c.bf16 %v92_v39, %v92_v39  ;;  %v1093_v0 = vsel %vm1057_vm0, %v1089_v19, -1e+30  ;;  %v1094_v32 = vsel %vm1060_vm1, %v1283_v12, -inf }
  0x6d   :  { %1034 = vmatprep.subr.bf16.mxu1 %v1454_v33  ;;  %1003 = vmatprep.mubr.bf16.mxu0 %v106_v38  ;;  %v1095_v33 = vsel %vm1060_vm1, %v1093_v0, -inf  ;;  %p1498_p3 = por %p1497_p2, %p1496_p1 }
  0x6e   :  { %1044 = vmatprep.mubr.bf16.mxu1 %v108_v41  ;;  %v1096_v35 = vmax.f32 %v1094_v32, %v1095_v33 }
  0x6f   :  { %994 = vmatpush2.bf16.msra.mxu0 %v1449_v36  ;;  %p1499_p4 = pnand %p1498_p3, %p1492_p0 }
  0x70   :  { %995 = vmatprep.subr.bf16.mxu0 %v1457_v37  ;;  %1035 = vmatpush2.bf16.msra.mxu1 %v1452_v40 }
  0x71   :  { %1036 = vmatprep.subr.bf16.mxu1 %v1460_v17 }
  0x73   :  { %996 = vmatpush2.bf16.msra.mxu0 %v1455_v42 }
  0x74   :  { %997 = vmatprep.subr.bf16.mxu0 %v1463_v43  ;;  %1037 = vmatpush2.bf16.msra.mxu1 %v1458_v44 }
  0x75   :  { %1038 = vmatprep.subr.bf16.mxu1 %v1466_v45 }
  0x77   :  { %998 = vmatpush2.bf16.msra.mxu0 %v1461_v46 }
  0x78   :  { %999 = vmatprep.subr.bf16.mxu0 %v1469_v47  ;;  %1039 = vmatpush2.bf16.msra.mxu1 %v1464_v48 }
  0x79   :  { %1040 = vmatprep.subr.bf16.mxu1 %v1472_v49 }
  0x7b   :  { %1000 = vmatpush2.bf16.msra.mxu0 %v1467_v50 }
  0x7c   :  { %1001 = vmatprep.subr.bf16.mxu0 %v1475_v51  ;;  %1041 = vmatpush2.bf16.msra.mxu1 %v1470_v52 }
  0x7d   :  { %1042 = vmatprep.subr.bf16.mxu1 %v1478_v53 }
  0x7f   :  { %1002 = vmatpush2.bf16.msra.mxu0 %v1473_v54 }
  0x80   :  { %1043 = vmatpush2.bf16.msra.mxu1 %v1476_v55 }
  0x82   :  { %1004 = vmatmul.mubr.bf16.vlgmr.msra.gmra.mxu0 %v105_v56 }
  0x83   :  { %1045 = vmatmul.mubr.bf16.vlgmr.msra.gmra.mxu1 %v107_v57 }
 0x102   :  { %v923_v58 = vpop.f32.mrf.mxu0 }
 0x103   :  { %v964_v59 = vpop.f32.mrf.mxu1  ;;  %v924_v8 = vadd.f32 %v923_v58, %v242_v6 }
 0x104   :  { %v925_v60 = vpop.f32.mrf.mxu0 }
 0x105   :  { %v966_v61 = vpop.f32.mrf.mxu1  ;;  %v926_v11 = vadd.f32 %v925_v60, %v246_v7  ;;  %v965_v13 = vadd.f32 %v964_v59, %v924_v8 }
 0x106   :  { %v927_v62 = vpop.f32.mrf.mxu0 }
 0x107   :  { %v968_v63 = vpop.f32.mrf.mxu1  ;;  %v967_v16 = vadd.f32 %v966_v61, %v926_v11 }
 0x108   :  { %v928_v1 = vpop.f32.mrf.mxu0 }
 0x109   :  { %v969_v2 = vpop.f32.mrf.mxu1 }
 0x142   :  { %v1005_v14 = vpop.f32.mrf.mxu0 }
 0x143   :  { %v1006_v18 = vadd.f32 %v1005_v14, %v965_v13  ;;  %v1046_v20 = vpop.f32.mrf.mxu1 }
 0x144   :  { %v1007_v21 = vpop.f32.mrf.mxu0 }
 0x145   :  { %v1008_v22 = vadd.f32 %v1007_v21, %v967_v16  ;;  %v1047_v10 = vadd.f32 %v1046_v20, %v1006_v18  ;;  %v1048_v23 = vpop.f32.mrf.mxu1 }
 0x146   :  { %v1009_v24 = vpop.f32.mrf.mxu0 }
 0x147   :  { %v1049_v25 = vadd.f32 %v1048_v23, %v1008_v22  ;;  %v1050_v26 = vpop.f32.mrf.mxu1  ;;  %v1061_v30 = vsel %vm1060_vm1, %v1047_v10, -inf }
 0x148   :  { %v1010_v27 = vpop.f32.mrf.mxu0 }
 0x149   :  { %v1059_v28 = vsel %vm1057_vm0, %v1049_v25, -1e+30  ;;  %v1051_v29 = vpop.f32.mrf.mxu1 }
 0x14a   :  { %v1062_v31 = vsel %vm1060_vm1, %v1059_v28, -inf }
 0x14b   :  { %v1063_v34 = vmax.f32 %v1061_v30, %v1062_v31 }
 0x14d   :  { %1064 = vmax.xlane.f32.xlu0 %v1063_v34 }
 0x151   :  { %1097 = vmax.xlane.f32.xlu0 %v1096_v35 }
 0x1d6   :  { %v1065_v36 = vpop.xlane.xlu0 %1064 }
 0x1d7   :  { %v1066_v37 = vsub.f32 %v1047_v10, %v1065_v36  ;;  %v1067_v38 = vsub.f32 %v1059_v28, %v1065_v36 }
 0x1d9   :  { %v1068_v39 = vmul.f32 1.442695, %v1066_v37  ;;  %v1070_v40 = vmul.f32 1.442695, %v1067_v38 }
 0x1da   :  { %v1098_v17 = vpop.xlane.xlu0 %1097 }
 0x1db   :  { %1479 = vpow2.f32 %v1068_v39  ;;  %v1099_v41 = vsub.f32 %v1283_v12, %v1098_v17  ;;  %v1100_v42 = vsub.f32 %v1093_v0, %v1098_v17 }
 0x1dc   :  { %1481 = vpow2.f32 %v1070_v40 }
 0x1dd   :  { %v1101_v43 = vmul.f32 1.442695, %v1099_v41  ;;  %v1103_v44 = vmul.f32 1.442695, %v1100_v42 }
 0x1df   :  { %1483 = vpow2.f32 %v1101_v43 }
 0x1e0   :  { %1485 = vpow2.f32 %v1103_v44 }
 0x1e8   :  { %v1480_v45 = vpop.eup %1479 }
 0x1e9   :  { %v1482_v46 = vpop.eup %1481  ;;  %v1072_v47 = vsel %vm1060_vm1, %v1480_v45, 0.0 }
 0x1ea   :  { %v1073_v48 = vsel %vm1060_vm1, %v1482_v46, 0.0 }
 0x1eb   :  { %v1074_v49 = vadd.f32 %v1073_v48, %v1072_v47 }
 0x1ec   :  { %v1484_v50 = vpop.eup %1483 }
 0x1ed   :  { %v1486_v51 = vpop.eup %1485  ;;  %1075 = vadd.xlane.f32.xlu1 %v1074_v49  ;;  %v1105_v52 = vsel %vm1060_vm1, %v1484_v50, 0.0 }
 0x1ee   :  { %v1106_v53 = vsel %vm1060_vm1, %v1486_v51, 0.0 }
 0x1ef   :  { %v1107_v54 = vadd.f32 %v1106_v53, %v1105_v52 }
 0x1f1   :  { %1108 = vadd.xlane.f32.xlu1 %v1107_v54 }
 0x276   :  { %v1076_v55 = vpop.xlane.xlu1 %1075 }
 0x277   :  { %1487 = vrcp.f32 %v1076_v55 }
 0x27a   :  { %v1109_v56 = vpop.xlane.xlu1 %1108 }
 0x27b   :  { %1489 = vrcp.f32 %v1109_v56 }
 0x284   :  { %v1488_v57 = vpop.eup %1487 }
 0x285   :  { %v1078_v59 = vmul.f32 %v1488_v57, %v1480_v45  ;;  %v1079_v60 = vmul.f32 %v1488_v57, %v1482_v46 }
 0x288   :  { %v1490_v58 = vpop.eup %1489 }
 0x289   :  { %v1111_v61 = vmul.f32 %v1490_v58, %v1484_v50  ;;  %v1112_v62 = vmul.f32 %v1490_v58, %v1486_v51 }
 0x28b   :  { %v1113_v63 = vadd.f32 %v1111_v61, %v1078_v59  ;;  %v1114_v1 = vadd.f32 %v1112_v62, %v1079_v60 }
 0x28d   :  { %v1117_v2 = vcombine.low %v1113_v63, %v1114_v1 }
 0x28f   :  { %1284 = vst.sshfl [vmem:[#allocation2] sm:$0x33 pattern:$0x76325410] %v1117_v2 }
 0x290   :  { %1502 = shalt.err (!%p1499_p4)
}
 0x291   :  { %1136 = dma.vmem_to_hbm [thread:$0]  %s1134_s3, 64, %s2006_s4, [#allocation3]  }
 0x292   :  { %1511 = dma.done.wait [#allocation3], 64  }
 0x293   :  { %1512 = vsyncadd [#allocation3], 4294967232 }
 0x294   :  { %1140 = vsyncpa [#allocation3], 1 }

</bundles_post_ra>
